<compile_context>
chip_gen: v5e
topology: v5e:2x2
jax: 0.10.0
libtpu: 0.0.40
codegen_flags: <defaults>
</compile_context>

<pallas_src>
import functools
import math

import jax
import jax.numpy as jnp
from jax.experimental import pallas as pl
from jax.experimental.pallas import tpu as pltpu

# ---- model hyper-parameters (small, consistent with the module) ----
D_MODEL = 32
N_HEAD = 4
D_K = D_MODEL // N_HEAD
D_FF = 64
EPS = 1e-5          # default LayerNorm eps == layer_norm_eps
NEG_INF = -1e30     # stands in for float('-inf') in masked_fill_


# ---------------- in-kernel math ----------------
def _layer_norm(x, g, b):
    mean = jnp.mean(x, axis=-1, keepdims=True)
    var = jnp.mean(jnp.square(x - mean), axis=-1, keepdims=True)
    return (x - mean) * jax.lax.rsqrt(var + EPS) * g + b


def _softmax_fast(x):
    m = jnp.max(x, axis=-1, keepdims=True)
    e = jnp.exp(x - m)
    return e * pl.reciprocal(jnp.sum(e, axis=-1, keepdims=True), approx=True)


def _mha(x_q, x_kv, mask_add, batch, s_q, s_kv,
         wq_h, bq_h, wk_h, bk_h, wv_h, bv_h, wo_h, bo):
    """Multi-head attention on flattened activations.

    x_q: (batch*s_q, D), x_kv: (batch*s_kv, D).  mask_add: (s_q, s_kv) additive mask
    (0 = keep, NEG_INF = masked).  wq_h/wk_h/wv_h: (H, D, D_K) refs, bq_h/bk_h/bv_h:
    (H, 1, D_K) refs, wo_h: (H, D_K, D) ref, bo: (1, D) ref.
    """
    scale = 1.0 / math.sqrt(D_K)
    out = None
    # Static unroll over heads.  Per-head weight slabs mean no unaligned lane slices and
    # no concatenate; per-head matmuls keep M = batch*s rows for decent MXU fill.
    for h in range(N_HEAD):
        q = (jnp.dot(x_q, wq_h[h], preferred_element_type=jnp.float32) + bq_h[h]
             ).reshape(batch, s_q, D_K)
        k = (jnp.dot(x_kv, wk_h[h], preferred_element_type=jnp.float32) + bk_h[h]
             ).reshape(batch, s_kv, D_K)
        v = (jnp.dot(x_kv, wv_h[h], preferred_element_type=jnp.float32) + bv_h[h]
             ).reshape(batch, s_kv, D_K)
        s = jnp.einsum("bqd,bkd->bqk", q, k,
                       preferred_element_type=jnp.float32) * scale
        s = s + mask_add[None, :, :]
        p = _softmax_fast(s)
        o = jnp.einsum("bqk,bkd->bqd", p, v,
                       preferred_element_type=jnp.float32).reshape(batch * s_q, D_K)
        contrib = jnp.dot(o, wo_h[h], preferred_element_type=jnp.float32)
        out = contrib if out is None else out + contrib
    return out + bo[...]


# ---------------- Pallas kernel: whole batch in one invocation ----------------
def decoder_layer_kernel(
    tgt_ref, src_ref, tmask_ref, smask_ref,
    wq1, bq1, wk1, bk1, wv1, bv1, wo1, bo1, g1, be1,
    wq2, bq2, wk2, bk2, wv2, bv2, wo2, bo2, g2, be2,
    w1, b1, w2, b2, g3, be3,
    out_ref, *, batch, s_tgt, s_src,
):
    x = tgt_ref[...]            # (batch*s_tgt, D)
    src = src_ref[...]          # (batch*s_src, D)
    tmask = tmask_ref[...]      # (s_tgt, s_tgt) additive mask
    smask = smask_ref[...]      # (s_tgt, s_src) additive mask

    # masked self-attention + residual + LayerNorm   (dropout1 = identity, eval mode)
    sa = _mha(x, x, tmask, batch, s_tgt, s_tgt,
              wq1, bq1, wk1, bk1, wv1, bv1, wo1, bo1)
    x = _layer_norm(x + sa, g1[...], be1[...])

    # cross-attention + residual + LayerNorm         (dropout2 = identity)
    ca = _mha(x, src, smask, batch, s_tgt, s_src,
              wq2, bq2, wk2, bk2, wv2, bv2, wo2, bo2)
    x = _layer_norm(x + ca, g2[...], be2[...])

    # feed-forward + residual + LayerNorm            (dropout3 = identity)
    hdn = jnp.maximum(jnp.dot(x, w1[...], preferred_element_type=jnp.float32) + b1[...], 0.0)
    ff = jnp.dot(hdn, w2[...], preferred_element_type=jnp.float32) + b2[...]
    x = _layer_norm(x + ff, g3[...], be3[...])

    out_ref[...] = x.astype(out_ref.dtype)


# ---------------- wrapper ----------------
def transformer_decoder_layer(src, tgt, params, src_mask, tgt_mask):
    batch, s_tgt, d = tgt.shape
    _, s_src, _ = src.shape
    assert d == D_MODEL

    def split_in(w):      # (D, D) -> (H, D, D_K): per-head columns of a projection
        return w.reshape(D_MODEL, N_HEAD, D_K).transpose(1, 0, 2)

    def split_bias(b):    # (1, D) -> (H, 1, D_K)
        return b.reshape(1, N_HEAD, D_K).transpose(1, 0, 2)

    def split_out(w):     # (D, D) -> (H, D_K, D): per-head rows of the output proj
        return w.reshape(N_HEAD, D_K, D_MODEL)

    weights = []
    for sfx in ("1", "2"):                         # self-attn ("1"), cross-attn ("2")
        weights += [
            split_in(params[f"wq{sfx}"]), split_bias(params[f"bq{sfx}"]),
            split_in(params[f"wk{sfx}"]), split_bias(params[f"bk{sfx}"]),
            split_in(params[f"wv{sfx}"]), split_bias(params[f"bv{sfx}"]),
            split_out(params[f"wo{sfx}"]), params[f"bo{sfx}"],
            params[f"g{sfx}"], params[f"be{sfx}"],
        ]
    weights += [params["w1"], params["b1"], params["w2"], params["b2"],
                params["g3"], params["be3"]]

    # Flatten activations in the wrapper (free XLA reshape) so the kernel works on
    # lane-friendly 2D (B*S, D) slabs and there is no per-batch grid loop.
    tgt2d = tgt.reshape(batch * s_tgt, D_MODEL)
    src2d = src.reshape(batch * s_src, D_MODEL)

    # Additive masks precomputed once, shared across the batch and all heads.
    tmask_add = tgt_mask.astype(jnp.float32) * NEG_INF
    smask_add = src_mask.astype(jnp.float32) * NEG_INF

    kernel = functools.partial(decoder_layer_kernel,
                               batch=batch, s_tgt=s_tgt, s_src=s_src)

    out2d = pl.pallas_call(
        kernel,
        out_shape=jax.ShapeDtypeStruct((batch * s_tgt, D_MODEL), jnp.float32),
        compiler_params=pltpu.CompilerParams(vmem_limit_bytes=32 * 1024 * 1024),
    )(tgt2d, src2d, tmask_add, smask_add, *weights)
    return out2d.reshape(batch, s_tgt, D_MODEL)


# ---------------- deterministic parameter init (mirrors nn.Linear / nn.LayerNorm) ----------------
def init_params(key):
    params = {}
    keys = iter(jax.random.split(key, 64))

    def linear(d_in, d_out):
        bound = 1.0 / math.sqrt(d_in)
        w = jax.random.uniform(next(keys), (d_in, d_out), jnp.float32, -bound, bound)
        b = jax.random.uniform(next(keys), (1, d_out), jnp.float32, -bound, bound)
        return w, b

    for suffix in ("1", "2"):
        for name in ("q", "k", "v", "o"):
            w, b = linear(D_MODEL, D_MODEL)
            params[f"w{name}{suffix}"] = w
            params[f"b{name}{suffix}"] = b
        params[f"g{suffix}"] = jnp.ones((1, D_MODEL), jnp.float32)
        params[f"be{suffix}"] = jnp.zeros((1, D_MODEL), jnp.float32)

    params["w1"], params["b1"] = linear(D_MODEL, D_FF)
    params["w2"], params["b2"] = linear(D_FF, D_MODEL)
    params["g3"] = jnp.ones((1, D_MODEL), jnp.float32)
    params["be3"] = jnp.zeros((1, D_MODEL), jnp.float32)
    return params


# ---------------- pure-JAX reference (exact softmax, full-width weights) ----------------
def ref_forward(src, tgt, params, src_mask, tgt_mask):
    def mha(xq, xkv, mask, wq, bq, wk, bk, wv, bv, wo, bo):
        b, sq, d = xq.shape
        skv = xkv.shape[1]
        q = (xq @ wq + bq).reshape(b, sq, N_HEAD, D_K).transpose(0, 2, 1, 3)
        k = (xkv @ wk + bk).reshape(b, skv, N_HEAD, D_K).transpose(0, 2, 1, 3)
        v = (xkv @ wv + bv).reshape(b, skv, N_HEAD, D_K).transpose(0, 2, 1, 3)
        s = jnp.einsum("bhqd,bhkd->bhqk", q, k) / math.sqrt(D_K)
        s = jnp.where(mask[None, None] > 0.5, NEG_INF, s)
        p = jax.nn.softmax(s, axis=-1)
        o = jnp.einsum("bhqk,bhkd->bhqd", p, v).transpose(0, 2, 1, 3).reshape(b, sq, d)
        return o @ wo + bo

    def ln(x, g, b):
        mean = jnp.mean(x, axis=-1, keepdims=True)
        var = jnp.mean((x - mean) ** 2, axis=-1, keepdims=True)
        return (x - mean) * jax.lax.rsqrt(var + EPS) * g + b

    p = params
    x = ln(tgt + mha(tgt, tgt, tgt_mask, p["wq1"], p["bq1"], p["wk1"], p["bk1"],
                     p["wv1"], p["bv1"], p["wo1"], p["bo1"]), p["g1"], p["be1"])
    x = ln(x + mha(x, src, src_mask, p["wq2"], p["bq2"], p["wk2"], p["bk2"],
                   p["wv2"], p["bv2"], p["wo2"], p["bo2"]), p["g2"], p["be2"])
    h = jnp.maximum(x @ p["w1"] + p["b1"], 0.0)
    x = ln(x + h @ p["w2"] + p["b2"], p["g3"], p["be3"])
    return x


if __name__ == "__main__":
    B, S_T, S_S = 2, 8, 8
    key = jax.random.PRNGKey(0)
    k_params, k_src, k_tgt = jax.random.split(key, 3)

    params = init_params(k_params)
    src = jax.random.normal(k_src, (B, S_S, D_MODEL), jnp.float32)
    tgt = jax.random.normal(k_tgt, (B, S_T, D_MODEL), jnp.float32)

    # tgt_mask: causal (mask[i, j] == 1 means position j > i is masked with -inf)
    rows = jnp.arange(S_T)[:, None]
    cols = jnp.arange(S_T)[None, :]
    tgt_mask = (cols > rows).astype(jnp.float32)
    # src_mask: None in PyTorch default -> all zeros (no masking)
    src_mask = jnp.zeros((S_T, S_S), jnp.float32)

    out = transformer_decoder_layer(src, tgt, params, src_mask, tgt_mask)
    out = jax.block_until_ready(out)

    ref = ref_forward(src, tgt, params, src_mask, tgt_mask)
    assert out.shape == (B, S_T, D_MODEL)
    # tolerance loosened slightly because the kernel softmax uses the EUP approximate
    # reciprocal (pl.reciprocal(..., approx=True)); everything else is exact f32.
    assert jnp.allclose(out, ref, rtol=2e-3, atol=2e-3), "Pallas output != JAX reference"

    # TODO(synk): dropout layers are treated as identity (inference mode); training-mode
    # stochastic dropout would need pltpu.prng_* inside the kernel.
    print("KERNEL_OK")
</pallas_src>

<mosaic_0001>
module attributes {stable_mosaic.version = 11 : i64} {
  func.func @decoder_layer_kernel(%arg0: memref<16x32xf32, #tpu.memory_space<vmem>>, %arg1: memref<16x32xf32, #tpu.memory_space<vmem>>, %arg2: memref<8x8xf32, #tpu.memory_space<vmem>>, %arg3: memref<8x8xf32, #tpu.memory_space<vmem>>, %arg4: memref<4x32x8xf32, #tpu.memory_space<vmem>>, %arg5: memref<4x1x8xf32, #tpu.memory_space<vmem>>, %arg6: memref<4x32x8xf32, #tpu.memory_space<vmem>>, %arg7: memref<4x1x8xf32, #tpu.memory_space<vmem>>, %arg8: memref<4x32x8xf32, #tpu.memory_space<vmem>>, %arg9: memref<4x1x8xf32, #tpu.memory_space<vmem>>, %arg10: memref<4x8x32xf32, #tpu.memory_space<vmem>>, %arg11: memref<1x32xf32, #tpu.memory_space<vmem>>, %arg12: memref<1x32xf32, #tpu.memory_space<vmem>>, %arg13: memref<1x32xf32, #tpu.memory_space<vmem>>, %arg14: memref<4x32x8xf32, #tpu.memory_space<vmem>>, %arg15: memref<4x1x8xf32, #tpu.memory_space<vmem>>, %arg16: memref<4x32x8xf32, #tpu.memory_space<vmem>>, %arg17: memref<4x1x8xf32, #tpu.memory_space<vmem>>, %arg18: memref<4x32x8xf32, #tpu.memory_space<vmem>>, %arg19: memref<4x1x8xf32, #tpu.memory_space<vmem>>, %arg20: memref<4x8x32xf32, #tpu.memory_space<vmem>>, %arg21: memref<1x32xf32, #tpu.memory_space<vmem>>, %arg22: memref<1x32xf32, #tpu.memory_space<vmem>>, %arg23: memref<1x32xf32, #tpu.memory_space<vmem>>, %arg24: memref<32x64xf32, #tpu.memory_space<vmem>>, %arg25: memref<1x64xf32, #tpu.memory_space<vmem>>, %arg26: memref<64x32xf32, #tpu.memory_space<vmem>>, %arg27: memref<1x32xf32, #tpu.memory_space<vmem>>, %arg28: memref<1x32xf32, #tpu.memory_space<vmem>>, %arg29: memref<1x32xf32, #tpu.memory_space<vmem>>, %arg30: memref<16x32xf32, #tpu.memory_space<vmem>>) attributes {dimension_semantics = [], scalar_prefetch = 0 : i64, scratch_operands = 0 : i64, tpu.core_type = #tpu.core_type<tc>} {
    %c0 = arith.constant 0 : index
    %c0_0 = arith.constant 0 : index
    %0 = vector.load %arg0[%c0, %c0_0] : memref<16x32xf32, #tpu.memory_space<vmem>>, vector<16x32xf32>
    %c0_1 = arith.constant 0 : index
    %c0_2 = arith.constant 0 : index
    %1 = vector.load %arg1[%c0_1, %c0_2] : memref<16x32xf32, #tpu.memory_space<vmem>>, vector<16x32xf32>
    %c0_3 = arith.constant 0 : index
    %c0_4 = arith.constant 0 : index
    %2 = vector.load %arg2[%c0_3, %c0_4] : memref<8x8xf32, #tpu.memory_space<vmem>>, vector<8x8xf32>
    %c0_5 = arith.constant 0 : index
    %c0_6 = arith.constant 0 : index
    %3 = vector.load %arg3[%c0_5, %c0_6] : memref<8x8xf32, #tpu.memory_space<vmem>>, vector<8x8xf32>
    %c0_7 = arith.constant 0 : index
    %c0_8 = arith.constant 0 : index
    %c0_9 = arith.constant 0 : index
    %4 = vector.load %arg4[%c0_7, %c0_8, %c0_9] : memref<4x32x8xf32, #tpu.memory_space<vmem>>, vector<1x32x8xf32>
    %5 = vector.shape_cast %4 : vector<1x32x8xf32> to vector<32x8xf32>
    %cst = arith.constant dense<0.000000e+00> : vector<16x8xf32>
    %6 = tpu.matmul %0, %5, %cst {dimension_numbers = #tpu.dot_dimension_numbers<[1], [0], [0], [1], [0, 0, 1, 1], [], []>} : vector<16x32xf32>, vector<32x8xf32>, vector<16x8xf32> -> vector<16x8xf32>
    %c0_10 = arith.constant 0 : index
    %c0_11 = arith.constant 0 : index
    %c0_12 = arith.constant 0 : index
    %7 = vector.load %arg5[%c0_10, %c0_11, %c0_12] : memref<4x1x8xf32, #tpu.memory_space<vmem>>, vector<1x1x8xf32>
    %8 = vector.shape_cast %7 : vector<1x1x8xf32> to vector<1x8xf32>
    %9 = vector.broadcast %8 : vector<1x8xf32> to vector<16x8xf32>
    %10 = arith.addf %6, %9 : vector<16x8xf32>
    %11 = vector.shape_cast %10 : vector<16x8xf32> to vector<2x8x8xf32>
    %c0_13 = arith.constant 0 : index
    %c0_14 = arith.constant 0 : index
    %c0_15 = arith.constant 0 : index
    %12 = vector.load %arg6[%c0_13, %c0_14, %c0_15] : memref<4x32x8xf32, #tpu.memory_space<vmem>>, vector<1x32x8xf32>
    %13 = vector.shape_cast %12 : vector<1x32x8xf32> to vector<32x8xf32>
    %cst_16 = arith.constant dense<0.000000e+00> : vector<16x8xf32>
    %14 = tpu.matmul %0, %13, %cst_16 {dimension_numbers = #tpu.dot_dimension_numbers<[1], [0], [0], [1], [0, 0, 1, 1], [], []>} : vector<16x32xf32>, vector<32x8xf32>, vector<16x8xf32> -> vector<16x8xf32>
    %c0_17 = arith.constant 0 : index
    %c0_18 = arith.constant 0 : index
    %c0_19 = arith.constant 0 : index
    %15 = vector.load %arg7[%c0_17, %c0_18, %c0_19] : memref<4x1x8xf32, #tpu.memory_space<vmem>>, vector<1x1x8xf32>
    %16 = vector.shape_cast %15 : vector<1x1x8xf32> to vector<1x8xf32>
    %17 = vector.broadcast %16 : vector<1x8xf32> to vector<16x8xf32>
    %18 = arith.addf %14, %17 : vector<16x8xf32>
    %19 = vector.shape_cast %18 : vector<16x8xf32> to vector<2x8x8xf32>
    %c0_20 = arith.constant 0 : index
    %c0_21 = arith.constant 0 : index
    %c0_22 = arith.constant 0 : index
    %20 = vector.load %arg8[%c0_20, %c0_21, %c0_22] : memref<4x32x8xf32, #tpu.memory_space<vmem>>, vector<1x32x8xf32>
    %21 = vector.shape_cast %20 : vector<1x32x8xf32> to vector<32x8xf32>
    %cst_23 = arith.constant dense<0.000000e+00> : vector<16x8xf32>
    %22 = tpu.matmul %0, %21, %cst_23 {dimension_numbers = #tpu.dot_dimension_numbers<[1], [0], [0], [1], [0, 0, 1, 1], [], []>} : vector<16x32xf32>, vector<32x8xf32>, vector<16x8xf32> -> vector<16x8xf32>
    %c0_24 = arith.constant 0 : index
    %c0_25 = arith.constant 0 : index
    %c0_26 = arith.constant 0 : index
    %23 = vector.load %arg9[%c0_24, %c0_25, %c0_26] : memref<4x1x8xf32, #tpu.memory_space<vmem>>, vector<1x1x8xf32>
    %24 = vector.shape_cast %23 : vector<1x1x8xf32> to vector<1x8xf32>
    %25 = vector.broadcast %24 : vector<1x8xf32> to vector<16x8xf32>
    %26 = arith.addf %22, %25 : vector<16x8xf32>
    %27 = vector.shape_cast %26 : vector<16x8xf32> to vector<2x8x8xf32>
    "tpu.trace_start"() <{level = 10 : i32, message = "bqd,bkd->bqk"}> : () -> ()
    %cst_27 = arith.constant dense<0.000000e+00> : vector<2x8x8xf32>
    %28 = tpu.matmul %11, %19, %cst_27 {dimension_numbers = #tpu.dot_dimension_numbers<[2], [2], [1], [1], [0, 0, 0, 1, 1, 1], [0], [0]>} : vector<2x8x8xf32>, vector<2x8x8xf32>, vector<2x8x8xf32> -> vector<2x8x8xf32>
    "tpu.trace_stop"() : () -> ()
    %cst_28 = arith.constant 0.353553385 : f32
    %29 = vector.broadcast %cst_28 : f32 to vector<2x8x8xf32>
    %30 = arith.mulf %28, %29 : vector<2x8x8xf32>
    %31 = vector.shape_cast %2 : vector<8x8xf32> to vector<1x8x8xf32>
    %32 = vector.broadcast %31 : vector<1x8x8xf32> to vector<2x8x8xf32>
    %33 = arith.addf %30, %32 : vector<2x8x8xf32>
    %cst_29 = arith.constant dense<0xFF800000> : vector<2x8xf32>
    %34 = vector.multi_reduction <maximumf>, %33, %cst_29 [2] : vector<2x8x8xf32> to vector<2x8xf32>
    %35 = vector.shape_cast %34 : vector<2x8xf32> to vector<2x8x1xf32>
    %36 = vector.broadcast %35 : vector<2x8x1xf32> to vector<2x8x8xf32>
    %37 = arith.subf %33, %36 : vector<2x8x8xf32>
    %38 = math.exp %37 : vector<2x8x8xf32>
    %cst_30 = arith.constant dense<0.000000e+00> : vector<2x8xf32>
    %39 = vector.multi_reduction <add>, %38, %cst_30 [2] : vector<2x8x8xf32> to vector<2x8xf32>
    %40 = vector.shape_cast %39 : vector<2x8xf32> to vector<2x8x1xf32>
    %41 = tpu.reciprocal %40 {approx = true} : vector<2x8x1xf32> -> vector<2x8x1xf32>
    %42 = vector.broadcast %41 : vector<2x8x1xf32> to vector<2x8x8xf32>
    %43 = arith.mulf %38, %42 : vector<2x8x8xf32>
    "tpu.trace_start"() <{level = 10 : i32, message = "bqk,bkd->bqd"}> : () -> ()
    %cst_31 = arith.constant dense<0.000000e+00> : vector<2x8x8xf32>
    %44 = tpu.matmul %43, %27, %cst_31 {dimension_numbers = #tpu.dot_dimension_numbers<[2], [1], [1], [2], [0, 0, 0, 1, 1, 2], [0], [0]>} : vector<2x8x8xf32>, vector<2x8x8xf32>, vector<2x8x8xf32> -> vector<2x8x8xf32>
    "tpu.trace_stop"() : () -> ()
    %45 = vector.shape_cast %44 : vector<2x8x8xf32> to vector<16x8xf32>
    %c0_32 = arith.constant 0 : index
    %c0_33 = arith.constant 0 : index
    %c0_34 = arith.constant 0 : index
    %46 = vector.load %arg10[%c0_32, %c0_33, %c0_34] : memref<4x8x32xf32, #tpu.memory_space<vmem>>, vector<1x8x32xf32>
    %47 = vector.shape_cast %46 : vector<1x8x32xf32> to vector<8x32xf32>
    %cst_35 = arith.constant dense<0.000000e+00> : vector<16x32xf32>
    %48 = tpu.matmul %45, %47, %cst_35 {dimension_numbers = #tpu.dot_dimension_numbers<[1], [0], [0], [1], [0, 0, 1, 1], [], []>} : vector<16x8xf32>, vector<8x32xf32>, vector<16x32xf32> -> vector<16x32xf32>
    %c1 = arith.constant 1 : index
    %c0_36 = arith.constant 0 : index
    %c0_37 = arith.constant 0 : index
    %49 = vector.load %arg4[%c1, %c0_36, %c0_37] : memref<4x32x8xf32, #tpu.memory_space<vmem>>, vector<1x32x8xf32>
    %50 = vector.shape_cast %49 : vector<1x32x8xf32> to vector<32x8xf32>
    %cst_38 = arith.constant dense<0.000000e+00> : vector<16x8xf32>
    %51 = tpu.matmul %0, %50, %cst_38 {dimension_numbers = #tpu.dot_dimension_numbers<[1], [0], [0], [1], [0, 0, 1, 1], [], []>} : vector<16x32xf32>, vector<32x8xf32>, vector<16x8xf32> -> vector<16x8xf32>
    %c1_39 = arith.constant 1 : index
    %c0_40 = arith.constant 0 : index
    %c0_41 = arith.constant 0 : index
    %52 = vector.load %arg5[%c1_39, %c0_40, %c0_41] : memref<4x1x8xf32, #tpu.memory_space<vmem>>, vector<1x1x8xf32>
    %53 = vector.shape_cast %52 : vector<1x1x8xf32> to vector<1x8xf32>
    %54 = vector.broadcast %53 : vector<1x8xf32> to vector<16x8xf32>
    %55 = arith.addf %51, %54 : vector<16x8xf32>
    %56 = vector.shape_cast %55 : vector<16x8xf32> to vector<2x8x8xf32>
    %c1_42 = arith.constant 1 : index
    %c0_43 = arith.constant 0 : index
    %c0_44 = arith.constant 0 : index
    %57 = vector.load %arg6[%c1_42, %c0_43, %c0_44] : memref<4x32x8xf32, #tpu.memory_space<vmem>>, vector<1x32x8xf32>
    %58 = vector.shape_cast %57 : vector<1x32x8xf32> to vector<32x8xf32>
    %cst_45 = arith.constant dense<0.000000e+00> : vector<16x8xf32>
    %59 = tpu.matmul %0, %58, %cst_45 {dimension_numbers = #tpu.dot_dimension_numbers<[1], [0], [0], [1], [0, 0, 1, 1], [], []>} : vector<16x32xf32>, vector<32x8xf32>, vector<16x8xf32> -> vector<16x8xf32>
    %c1_46 = arith.constant 1 : index
    %c0_47 = arith.constant 0 : index
    %c0_48 = arith.constant 0 : index
    %60 = vector.load %arg7[%c1_46, %c0_47, %c0_48] : memref<4x1x8xf32, #tpu.memory_space<vmem>>, vector<1x1x8xf32>
    %61 = vector.shape_cast %60 : vector<1x1x8xf32> to vector<1x8xf32>
    %62 = vector.broadcast %61 : vector<1x8xf32> to vector<16x8xf32>
    %63 = arith.addf %59, %62 : vector<16x8xf32>
    %64 = vector.shape_cast %63 : vector<16x8xf32> to vector<2x8x8xf32>
    %c1_49 = arith.constant 1 : index
    %c0_50 = arith.constant 0 : index
    %c0_51 = arith.constant 0 : index
    %65 = vector.load %arg8[%c1_49, %c0_50, %c0_51] : memref<4x32x8xf32, #tpu.memory_space<vmem>>, vector<1x32x8xf32>
    %66 = vector.shape_cast %65 : vector<1x32x8xf32> to vector<32x8xf32>
    %cst_52 = arith.constant dense<0.000000e+00> : vector<16x8xf32>
    %67 = tpu.matmul %0, %66, %cst_52 {dimension_numbers = #tpu.dot_dimension_numbers<[1], [0], [0], [1], [0, 0, 1, 1], [], []>} : vector<16x32xf32>, vector<32x8xf32>, vector<16x8xf32> -> vector<16x8xf32>
    %c1_53 = arith.constant 1 : index
    %c0_54 = arith.constant 0 : index
    %c0_55 = arith.constant 0 : index
    %68 = vector.load %arg9[%c1_53, %c0_54, %c0_55] : memref<4x1x8xf32, #tpu.memory_space<vmem>>, vector<1x1x8xf32>
    %69 = vector.shape_cast %68 : vector<1x1x8xf32> to vector<1x8xf32>
    %70 = vector.broadcast %69 : vector<1x8xf32> to vector<16x8xf32>
    %71 = arith.addf %67, %70 : vector<16x8xf32>
    %72 = vector.shape_cast %71 : vector<16x8xf32> to vector<2x8x8xf32>
    "tpu.trace_start"() <{level = 10 : i32, message = "bqd,bkd->bqk"}> : () -> ()
    %cst_56 = arith.constant dense<0.000000e+00> : vector<2x8x8xf32>
    %73 = tpu.matmul %56, %64, %cst_56 {dimension_numbers = #tpu.dot_dimension_numbers<[2], [2], [1], [1], [0, 0, 0, 1, 1, 1], [0], [0]>} : vector<2x8x8xf32>, vector<2x8x8xf32>, vector<2x8x8xf32> -> vector<2x8x8xf32>
    "tpu.trace_stop"() : () -> ()
    %cst_57 = arith.constant 0.353553385 : f32
    %74 = vector.broadcast %cst_57 : f32 to vector<2x8x8xf32>
    %75 = arith.mulf %73, %74 : vector<2x8x8xf32>
    %76 = vector.shape_cast %2 : vector<8x8xf32> to vector<1x8x8xf32>
    %77 = vector.broadcast %76 : vector<1x8x8xf32> to vector<2x8x8xf32>
    %78 = arith.addf %75, %77 : vector<2x8x8xf32>
    %cst_58 = arith.constant dense<0xFF800000> : vector<2x8xf32>
    %79 = vector.multi_reduction <maximumf>, %78, %cst_58 [2] : vector<2x8x8xf32> to vector<2x8xf32>
    %80 = vector.shape_cast %79 : vector<2x8xf32> to vector<2x8x1xf32>
    %81 = vector.broadcast %80 : vector<2x8x1xf32> to vector<2x8x8xf32>
    %82 = arith.subf %78, %81 : vector<2x8x8xf32>
    %83 = math.exp %82 : vector<2x8x8xf32>
    %cst_59 = arith.constant dense<0.000000e+00> : vector<2x8xf32>
    %84 = vector.multi_reduction <add>, %83, %cst_59 [2] : vector<2x8x8xf32> to vector<2x8xf32>
    %85 = vector.shape_cast %84 : vector<2x8xf32> to vector<2x8x1xf32>
    %86 = tpu.reciprocal %85 {approx = true} : vector<2x8x1xf32> -> vector<2x8x1xf32>
    %87 = vector.broadcast %86 : vector<2x8x1xf32> to vector<2x8x8xf32>
    %88 = arith.mulf %83, %87 : vector<2x8x8xf32>
    "tpu.trace_start"() <{level = 10 : i32, message = "bqk,bkd->bqd"}> : () -> ()
    %cst_60 = arith.constant dense<0.000000e+00> : vector<2x8x8xf32>
    %89 = tpu.matmul %88, %72, %cst_60 {dimension_numbers = #tpu.dot_dimension_numbers<[2], [1], [1], [2], [0, 0, 0, 1, 1, 2], [0], [0]>} : vector<2x8x8xf32>, vector<2x8x8xf32>, vector<2x8x8xf32> -> vector<2x8x8xf32>
    "tpu.trace_stop"() : () -> ()
    %90 = vector.shape_cast %89 : vector<2x8x8xf32> to vector<16x8xf32>
    %c1_61 = arith.constant 1 : index
    %c0_62 = arith.constant 0 : index
    %c0_63 = arith.constant 0 : index
    %91 = vector.load %arg10[%c1_61, %c0_62, %c0_63] : memref<4x8x32xf32, #tpu.memory_space<vmem>>, vector<1x8x32xf32>
    %92 = vector.shape_cast %91 : vector<1x8x32xf32> to vector<8x32xf32>
    %cst_64 = arith.constant dense<0.000000e+00> : vector<16x32xf32>
    %93 = tpu.matmul %90, %92, %cst_64 {dimension_numbers = #tpu.dot_dimension_numbers<[1], [0], [0], [1], [0, 0, 1, 1], [], []>} : vector<16x8xf32>, vector<8x32xf32>, vector<16x32xf32> -> vector<16x32xf32>
    %94 = arith.addf %48, %93 : vector<16x32xf32>
    %c2 = arith.constant 2 : index
    %c0_65 = arith.constant 0 : index
    %c0_66 = arith.constant 0 : index
    %95 = vector.load %arg4[%c2, %c0_65, %c0_66] : memref<4x32x8xf32, #tpu.memory_space<vmem>>, vector<1x32x8xf32>
    %96 = vector.shape_cast %95 : vector<1x32x8xf32> to vector<32x8xf32>
    %cst_67 = arith.constant dense<0.000000e+00> : vector<16x8xf32>
    %97 = tpu.matmul %0, %96, %cst_67 {dimension_numbers = #tpu.dot_dimension_numbers<[1], [0], [0], [1], [0, 0, 1, 1], [], []>} : vector<16x32xf32>, vector<32x8xf32>, vector<16x8xf32> -> vector<16x8xf32>
    %c2_68 = arith.constant 2 : index
    %c0_69 = arith.constant 0 : index
    %c0_70 = arith.constant 0 : index
    %98 = vector.load %arg5[%c2_68, %c0_69, %c0_70] : memref<4x1x8xf32, #tpu.memory_space<vmem>>, vector<1x1x8xf32>
    %99 = vector.shape_cast %98 : vector<1x1x8xf32> to vector<1x8xf32>
    %100 = vector.broadcast %99 : vector<1x8xf32> to vector<16x8xf32>
    %101 = arith.addf %97, %100 : vector<16x8xf32>
    %102 = vector.shape_cast %101 : vector<16x8xf32> to vector<2x8x8xf32>
    %c2_71 = arith.constant 2 : index
    %c0_72 = arith.constant 0 : index
    %c0_73 = arith.constant 0 : index
    %103 = vector.load %arg6[%c2_71, %c0_72, %c0_73] : memref<4x32x8xf32, #tpu.memory_space<vmem>>, vector<1x32x8xf32>
    %104 = vector.shape_cast %103 : vector<1x32x8xf32> to vector<32x8xf32>
    %cst_74 = arith.constant dense<0.000000e+00> : vector<16x8xf32>
    %105 = tpu.matmul %0, %104, %cst_74 {dimension_numbers = #tpu.dot_dimension_numbers<[1], [0], [0], [1], [0, 0, 1, 1], [], []>} : vector<16x32xf32>, vector<32x8xf32>, vector<16x8xf32> -> vector<16x8xf32>
    %c2_75 = arith.constant 2 : index
    %c0_76 = arith.constant 0 : index
    %c0_77 = arith.constant 0 : index
    %106 = vector.load %arg7[%c2_75, %c0_76, %c0_77] : memref<4x1x8xf32, #tpu.memory_space<vmem>>, vector<1x1x8xf32>
    %107 = vector.shape_cast %106 : vector<1x1x8xf32> to vector<1x8xf32>
    %108 = vector.broadcast %107 : vector<1x8xf32> to vector<16x8xf32>
    %109 = arith.addf %105, %108 : vector<16x8xf32>
    %110 = vector.shape_cast %109 : vector<16x8xf32> to vector<2x8x8xf32>
    %c2_78 = arith.constant 2 : index
    %c0_79 = arith.constant 0 : index
    %c0_80 = arith.constant 0 : index
    %111 = vector.load %arg8[%c2_78, %c0_79, %c0_80] : memref<4x32x8xf32, #tpu.memory_space<vmem>>, vector<1x32x8xf32>
    %112 = vector.shape_cast %111 : vector<1x32x8xf32> to vector<32x8xf32>
    %cst_81 = arith.constant dense<0.000000e+00> : vector<16x8xf32>
    %113 = tpu.matmul %0, %112, %cst_81 {dimension_numbers = #tpu.dot_dimension_numbers<[1], [0], [0], [1], [0, 0, 1, 1], [], []>} : vector<16x32xf32>, vector<32x8xf32>, vector<16x8xf32> -> vector<16x8xf32>
    %c2_82 = arith.constant 2 : index
    %c0_83 = arith.constant 0 : index
    %c0_84 = arith.constant 0 : index
    %114 = vector.load %arg9[%c2_82, %c0_83, %c0_84] : memref<4x1x8xf32, #tpu.memory_space<vmem>>, vector<1x1x8xf32>
    %115 = vector.shape_cast %114 : vector<1x1x8xf32> to vector<1x8xf32>
    %116 = vector.broadcast %115 : vector<1x8xf32> to vector<16x8xf32>
    %117 = arith.addf %113, %116 : vector<16x8xf32>
    %118 = vector.shape_cast %117 : vector<16x8xf32> to vector<2x8x8xf32>
    "tpu.trace_start"() <{level = 10 : i32, message = "bqd,bkd->bqk"}> : () -> ()
    %cst_85 = arith.constant dense<0.000000e+00> : vector<2x8x8xf32>
    %119 = tpu.matmul %102, %110, %cst_85 {dimension_numbers = #tpu.dot_dimension_numbers<[2], [2], [1], [1], [0, 0, 0, 1, 1, 1], [0], [0]>} : vector<2x8x8xf32>, vector<2x8x8xf32>, vector<2x8x8xf32> -> vector<2x8x8xf32>
    "tpu.trace_stop"() : () -> ()
    %cst_86 = arith.constant 0.353553385 : f32
    %120 = vector.broadcast %cst_86 : f32 to vector<2x8x8xf32>
    %121 = arith.mulf %119, %120 : vector<2x8x8xf32>
    %122 = vector.shape_cast %2 : vector<8x8xf32> to vector<1x8x8xf32>
    %123 = vector.broadcast %122 : vector<1x8x8xf32> to vector<2x8x8xf32>
    %124 = arith.addf %121, %123 : vector<2x8x8xf32>
    %cst_87 = arith.constant dense<0xFF800000> : vector<2x8xf32>
    %125 = vector.multi_reduction <maximumf>, %124, %cst_87 [2] : vector<2x8x8xf32> to vector<2x8xf32>
    %126 = vector.shape_cast %125 : vector<2x8xf32> to vector<2x8x1xf32>
    %127 = vector.broadcast %126 : vector<2x8x1xf32> to vector<2x8x8xf32>
    %128 = arith.subf %124, %127 : vector<2x8x8xf32>
    %129 = math.exp %128 : vector<2x8x8xf32>
    %cst_88 = arith.constant dense<0.000000e+00> : vector<2x8xf32>
    %130 = vector.multi_reduction <add>, %129, %cst_88 [2] : vector<2x8x8xf32> to vector<2x8xf32>
    %131 = vector.shape_cast %130 : vector<2x8xf32> to vector<2x8x1xf32>
    %132 = tpu.reciprocal %131 {approx = true} : vector<2x8x1xf32> -> vector<2x8x1xf32>
    %133 = vector.broadcast %132 : vector<2x8x1xf32> to vector<2x8x8xf32>
    %134 = arith.mulf %129, %133 : vector<2x8x8xf32>
    "tpu.trace_start"() <{level = 10 : i32, message = "bqk,bkd->bqd"}> : () -> ()
    %cst_89 = arith.constant dense<0.000000e+00> : vector<2x8x8xf32>
    %135 = tpu.matmul %134, %118, %cst_89 {dimension_numbers = #tpu.dot_dimension_numbers<[2], [1], [1], [2], [0, 0, 0, 1, 1, 2], [0], [0]>} : vector<2x8x8xf32>, vector<2x8x8xf32>, vector<2x8x8xf32> -> vector<2x8x8xf32>
    "tpu.trace_stop"() : () -> ()
    %136 = vector.shape_cast %135 : vector<2x8x8xf32> to vector<16x8xf32>
    %c2_90 = arith.constant 2 : index
    %c0_91 = arith.constant 0 : index
    %c0_92 = arith.constant 0 : index
    %137 = vector.load %arg10[%c2_90, %c0_91, %c0_92] : memref<4x8x32xf32, #tpu.memory_space<vmem>>, vector<1x8x32xf32>
    %138 = vector.shape_cast %137 : vector<1x8x32xf32> to vector<8x32xf32>
    %cst_93 = arith.constant dense<0.000000e+00> : vector<16x32xf32>
    %139 = tpu.matmul %136, %138, %cst_93 {dimension_numbers = #tpu.dot_dimension_numbers<[1], [0], [0], [1], [0, 0, 1, 1], [], []>} : vector<16x8xf32>, vector<8x32xf32>, vector<16x32xf32> -> vector<16x32xf32>
    %140 = arith.addf %94, %139 : vector<16x32xf32>
    %c3 = arith.constant 3 : index
    %c0_94 = arith.constant 0 : index
    %c0_95 = arith.constant 0 : index
    %141 = vector.load %arg4[%c3, %c0_94, %c0_95] : memref<4x32x8xf32, #tpu.memory_space<vmem>>, vector<1x32x8xf32>
    %142 = vector.shape_cast %141 : vector<1x32x8xf32> to vector<32x8xf32>
    %cst_96 = arith.constant dense<0.000000e+00> : vector<16x8xf32>
    %143 = tpu.matmul %0, %142, %cst_96 {dimension_numbers = #tpu.dot_dimension_numbers<[1], [0], [0], [1], [0, 0, 1, 1], [], []>} : vector<16x32xf32>, vector<32x8xf32>, vector<16x8xf32> -> vector<16x8xf32>
    %c3_97 = arith.constant 3 : index
    %c0_98 = arith.constant 0 : index
    %c0_99 = arith.constant 0 : index
    %144 = vector.load %arg5[%c3_97, %c0_98, %c0_99] : memref<4x1x8xf32, #tpu.memory_space<vmem>>, vector<1x1x8xf32>
    %145 = vector.shape_cast %144 : vector<1x1x8xf32> to vector<1x8xf32>
    %146 = vector.broadcast %145 : vector<1x8xf32> to vector<16x8xf32>
    %147 = arith.addf %143, %146 : vector<16x8xf32>
    %148 = vector.shape_cast %147 : vector<16x8xf32> to vector<2x8x8xf32>
    %c3_100 = arith.constant 3 : index
    %c0_101 = arith.constant 0 : index
    %c0_102 = arith.constant 0 : index
    %149 = vector.load %arg6[%c3_100, %c0_101, %c0_102] : memref<4x32x8xf32, #tpu.memory_space<vmem>>, vector<1x32x8xf32>
    %150 = vector.shape_cast %149 : vector<1x32x8xf32> to vector<32x8xf32>
    %cst_103 = arith.constant dense<0.000000e+00> : vector<16x8xf32>
    %151 = tpu.matmul %0, %150, %cst_103 {dimension_numbers = #tpu.dot_dimension_numbers<[1], [0], [0], [1], [0, 0, 1, 1], [], []>} : vector<16x32xf32>, vector<32x8xf32>, vector<16x8xf32> -> vector<16x8xf32>
    %c3_104 = arith.constant 3 : index
    %c0_105 = arith.constant 0 : index
    %c0_106 = arith.constant 0 : index
    %152 = vector.load %arg7[%c3_104, %c0_105, %c0_106] : memref<4x1x8xf32, #tpu.memory_space<vmem>>, vector<1x1x8xf32>
    %153 = vector.shape_cast %152 : vector<1x1x8xf32> to vector<1x8xf32>
    %154 = vector.broadcast %153 : vector<1x8xf32> to vector<16x8xf32>
    %155 = arith.addf %151, %154 : vector<16x8xf32>
    %156 = vector.shape_cast %155 : vector<16x8xf32> to vector<2x8x8xf32>
    %c3_107 = arith.constant 3 : index
    %c0_108 = arith.constant 0 : index
    %c0_109 = arith.constant 0 : index
    %157 = vector.load %arg8[%c3_107, %c0_108, %c0_109] : memref<4x32x8xf32, #tpu.memory_space<vmem>>, vector<1x32x8xf32>
    %158 = vector.shape_cast %157 : vector<1x32x8xf32> to vector<32x8xf32>
    %cst_110 = arith.constant dense<0.000000e+00> : vector<16x8xf32>
    %159 = tpu.matmul %0, %158, %cst_110 {dimension_numbers = #tpu.dot_dimension_numbers<[1], [0], [0], [1], [0, 0, 1, 1], [], []>} : vector<16x32xf32>, vector<32x8xf32>, vector<16x8xf32> -> vector<16x8xf32>
    %c3_111 = arith.constant 3 : index
    %c0_112 = arith.constant 0 : index
    %c0_113 = arith.constant 0 : index
    %160 = vector.load %arg9[%c3_111, %c0_112, %c0_113] : memref<4x1x8xf32, #tpu.memory_space<vmem>>, vector<1x1x8xf32>
    %161 = vector.shape_cast %160 : vector<1x1x8xf32> to vector<1x8xf32>
    %162 = vector.broadcast %161 : vector<1x8xf32> to vector<16x8xf32>
    %163 = arith.addf %159, %162 : vector<16x8xf32>
    %164 = vector.shape_cast %163 : vector<16x8xf32> to vector<2x8x8xf32>
    "tpu.trace_start"() <{level = 10 : i32, message = "bqd,bkd->bqk"}> : () -> ()
    %cst_114 = arith.constant dense<0.000000e+00> : vector<2x8x8xf32>
    %165 = tpu.matmul %148, %156, %cst_114 {dimension_numbers = #tpu.dot_dimension_numbers<[2], [2], [1], [1], [0, 0, 0, 1, 1, 1], [0], [0]>} : vector<2x8x8xf32>, vector<2x8x8xf32>, vector<2x8x8xf32> -> vector<2x8x8xf32>
    "tpu.trace_stop"() : () -> ()
    %cst_115 = arith.constant 0.353553385 : f32
    %166 = vector.broadcast %cst_115 : f32 to vector<2x8x8xf32>
    %167 = arith.mulf %165, %166 : vector<2x8x8xf32>
    %168 = vector.shape_cast %2 : vector<8x8xf32> to vector<1x8x8xf32>
    %169 = vector.broadcast %168 : vector<1x8x8xf32> to vector<2x8x8xf32>
    %170 = arith.addf %167, %169 : vector<2x8x8xf32>
    %cst_116 = arith.constant dense<0xFF800000> : vector<2x8xf32>
    %171 = vector.multi_reduction <maximumf>, %170, %cst_116 [2] : vector<2x8x8xf32> to vector<2x8xf32>
    %172 = vector.shape_cast %171 : vector<2x8xf32> to vector<2x8x1xf32>
    %173 = vector.broadcast %172 : vector<2x8x1xf32> to vector<2x8x8xf32>
    %174 = arith.subf %170, %173 : vector<2x8x8xf32>
    %175 = math.exp %174 : vector<2x8x8xf32>
    %cst_117 = arith.constant dense<0.000000e+00> : vector<2x8xf32>
    %176 = vector.multi_reduction <add>, %175, %cst_117 [2] : vector<2x8x8xf32> to vector<2x8xf32>
    %177 = vector.shape_cast %176 : vector<2x8xf32> to vector<2x8x1xf32>
    %178 = tpu.reciprocal %177 {approx = true} : vector<2x8x1xf32> -> vector<2x8x1xf32>
    %179 = vector.broadcast %178 : vector<2x8x1xf32> to vector<2x8x8xf32>
    %180 = arith.mulf %175, %179 : vector<2x8x8xf32>
    "tpu.trace_start"() <{level = 10 : i32, message = "bqk,bkd->bqd"}> : () -> ()
    %cst_118 = arith.constant dense<0.000000e+00> : vector<2x8x8xf32>
    %181 = tpu.matmul %180, %164, %cst_118 {dimension_numbers = #tpu.dot_dimension_numbers<[2], [1], [1], [2], [0, 0, 0, 1, 1, 2], [0], [0]>} : vector<2x8x8xf32>, vector<2x8x8xf32>, vector<2x8x8xf32> -> vector<2x8x8xf32>
    "tpu.trace_stop"() : () -> ()
    %182 = vector.shape_cast %181 : vector<2x8x8xf32> to vector<16x8xf32>
    %c3_119 = arith.constant 3 : index
    %c0_120 = arith.constant 0 : index
    %c0_121 = arith.constant 0 : index
    %183 = vector.load %arg10[%c3_119, %c0_120, %c0_121] : memref<4x8x32xf32, #tpu.memory_space<vmem>>, vector<1x8x32xf32>
    %184 = vector.shape_cast %183 : vector<1x8x32xf32> to vector<8x32xf32>
    %cst_122 = arith.constant dense<0.000000e+00> : vector<16x32xf32>
    %185 = tpu.matmul %182, %184, %cst_122 {dimension_numbers = #tpu.dot_dimension_numbers<[1], [0], [0], [1], [0, 0, 1, 1], [], []>} : vector<16x8xf32>, vector<8x32xf32>, vector<16x32xf32> -> vector<16x32xf32>
    %186 = arith.addf %140, %185 : vector<16x32xf32>
    %c0_123 = arith.constant 0 : index
    %c0_124 = arith.constant 0 : index
    %187 = vector.load %arg11[%c0_123, %c0_124] : memref<1x32xf32, #tpu.memory_space<vmem>>, vector<1x32xf32>
    %188 = vector.broadcast %187 : vector<1x32xf32> to vector<16x32xf32>
    %189 = arith.addf %186, %188 : vector<16x32xf32>
    %190 = arith.addf %0, %189 : vector<16x32xf32>
    %c0_125 = arith.constant 0 : index
    %c0_126 = arith.constant 0 : index
    %191 = vector.load %arg12[%c0_125, %c0_126] : memref<1x32xf32, #tpu.memory_space<vmem>>, vector<1x32xf32>
    %c0_127 = arith.constant 0 : index
    %c0_128 = arith.constant 0 : index
    %192 = vector.load %arg13[%c0_127, %c0_128] : memref<1x32xf32, #tpu.memory_space<vmem>>, vector<1x32xf32>
    %cst_129 = arith.constant dense<0.000000e+00> : vector<16xf32>
    %193 = vector.multi_reduction <add>, %190, %cst_129 [1] : vector<16x32xf32> to vector<16xf32>
    %194 = vector.shape_cast %193 : vector<16xf32> to vector<16x1xf32>
    %cst_130 = arith.constant 3.200000e+01 : f32
    %195 = vector.broadcast %cst_130 : f32 to vector<16x1xf32>
    %196 = arith.divf %194, %195 : vector<16x1xf32>
    %197 = vector.broadcast %196 : vector<16x1xf32> to vector<16x32xf32>
    %198 = arith.subf %190, %197 : vector<16x32xf32>
    %199 = arith.mulf %198, %198 : vector<16x32xf32>
    %cst_131 = arith.constant dense<0.000000e+00> : vector<16xf32>
    %200 = vector.multi_reduction <add>, %199, %cst_131 [1] : vector<16x32xf32> to vector<16xf32>
    %201 = vector.shape_cast %200 : vector<16xf32> to vector<16x1xf32>
    %cst_132 = arith.constant 3.200000e+01 : f32
    %202 = vector.broadcast %cst_132 : f32 to vector<16x1xf32>
    %203 = arith.divf %201, %202 : vector<16x1xf32>
    %204 = vector.broadcast %196 : vector<16x1xf32> to vector<16x32xf32>
    %205 = arith.subf %190, %204 : vector<16x32xf32>
    %cst_133 = arith.constant 9.99999974E-6 : f32
    %206 = vector.broadcast %cst_133 : f32 to vector<16x1xf32>
    %207 = arith.addf %203, %206 : vector<16x1xf32>
    %208 = math.rsqrt %207 : vector<16x1xf32>
    %209 = vector.broadcast %208 : vector<16x1xf32> to vector<16x32xf32>
    %210 = arith.mulf %205, %209 : vector<16x32xf32>
    %211 = vector.broadcast %191 : vector<1x32xf32> to vector<16x32xf32>
    %212 = arith.mulf %210, %211 : vector<16x32xf32>
    %213 = vector.broadcast %192 : vector<1x32xf32> to vector<16x32xf32>
    %214 = arith.addf %212, %213 : vector<16x32xf32>
    %c0_134 = arith.constant 0 : index
    %c0_135 = arith.constant 0 : index
    %c0_136 = arith.constant 0 : index
    %215 = vector.load %arg14[%c0_134, %c0_135, %c0_136] : memref<4x32x8xf32, #tpu.memory_space<vmem>>, vector<1x32x8xf32>
    %216 = vector.shape_cast %215 : vector<1x32x8xf32> to vector<32x8xf32>
    %cst_137 = arith.constant dense<0.000000e+00> : vector<16x8xf32>
    %217 = tpu.matmul %214, %216, %cst_137 {dimension_numbers = #tpu.dot_dimension_numbers<[1], [0], [0], [1], [0, 0, 1, 1], [], []>} : vector<16x32xf32>, vector<32x8xf32>, vector<16x8xf32> -> vector<16x8xf32>
    %c0_138 = arith.constant 0 : index
    %c0_139 = arith.constant 0 : index
    %c0_140 = arith.constant 0 : index
    %218 = vector.load %arg15[%c0_138, %c0_139, %c0_140] : memref<4x1x8xf32, #tpu.memory_space<vmem>>, vector<1x1x8xf32>
    %219 = vector.shape_cast %218 : vector<1x1x8xf32> to vector<1x8xf32>
    %220 = vector.broadcast %219 : vector<1x8xf32> to vector<16x8xf32>
    %221 = arith.addf %217, %220 : vector<16x8xf32>
    %222 = vector.shape_cast %221 : vector<16x8xf32> to vector<2x8x8xf32>
    %c0_141 = arith.constant 0 : index
    %c0_142 = arith.constant 0 : index
    %c0_143 = arith.constant 0 : index
    %223 = vector.load %arg16[%c0_141, %c0_142, %c0_143] : memref<4x32x8xf32, #tpu.memory_space<vmem>>, vector<1x32x8xf32>
    %224 = vector.shape_cast %223 : vector<1x32x8xf32> to vector<32x8xf32>
    %cst_144 = arith.constant dense<0.000000e+00> : vector<16x8xf32>
    %225 = tpu.matmul %1, %224, %cst_144 {dimension_numbers = #tpu.dot_dimension_numbers<[1], [0], [0], [1], [0, 0, 1, 1], [], []>} : vector<16x32xf32>, vector<32x8xf32>, vector<16x8xf32> -> vector<16x8xf32>
    %c0_145 = arith.constant 0 : index
    %c0_146 = arith.constant 0 : index
    %c0_147 = arith.constant 0 : index
    %226 = vector.load %arg17[%c0_145, %c0_146, %c0_147] : memref<4x1x8xf32, #tpu.memory_space<vmem>>, vector<1x1x8xf32>
    %227 = vector.shape_cast %226 : vector<1x1x8xf32> to vector<1x8xf32>
    %228 = vector.broadcast %227 : vector<1x8xf32> to vector<16x8xf32>
    %229 = arith.addf %225, %228 : vector<16x8xf32>
    %230 = vector.shape_cast %229 : vector<16x8xf32> to vector<2x8x8xf32>
    %c0_148 = arith.constant 0 : index
    %c0_149 = arith.constant 0 : index
    %c0_150 = arith.constant 0 : index
    %231 = vector.load %arg18[%c0_148, %c0_149, %c0_150] : memref<4x32x8xf32, #tpu.memory_space<vmem>>, vector<1x32x8xf32>
    %232 = vector.shape_cast %231 : vector<1x32x8xf32> to vector<32x8xf32>
    %cst_151 = arith.constant dense<0.000000e+00> : vector<16x8xf32>
    %233 = tpu.matmul %1, %232, %cst_151 {dimension_numbers = #tpu.dot_dimension_numbers<[1], [0], [0], [1], [0, 0, 1, 1], [], []>} : vector<16x32xf32>, vector<32x8xf32>, vector<16x8xf32> -> vector<16x8xf32>
    %c0_152 = arith.constant 0 : index
    %c0_153 = arith.constant 0 : index
    %c0_154 = arith.constant 0 : index
    %234 = vector.load %arg19[%c0_152, %c0_153, %c0_154] : memref<4x1x8xf32, #tpu.memory_space<vmem>>, vector<1x1x8xf32>
    %235 = vector.shape_cast %234 : vector<1x1x8xf32> to vector<1x8xf32>
    %236 = vector.broadcast %235 : vector<1x8xf32> to vector<16x8xf32>
    %237 = arith.addf %233, %236 : vector<16x8xf32>
    %238 = vector.shape_cast %237 : vector<16x8xf32> to vector<2x8x8xf32>
    "tpu.trace_start"() <{level = 10 : i32, message = "bqd,bkd->bqk"}> : () -> ()
    %cst_155 = arith.constant dense<0.000000e+00> : vector<2x8x8xf32>
    %239 = tpu.matmul %222, %230, %cst_155 {dimension_numbers = #tpu.dot_dimension_numbers<[2], [2], [1], [1], [0, 0, 0, 1, 1, 1], [0], [0]>} : vector<2x8x8xf32>, vector<2x8x8xf32>, vector<2x8x8xf32> -> vector<2x8x8xf32>
    "tpu.trace_stop"() : () -> ()
    %cst_156 = arith.constant 0.353553385 : f32
    %240 = vector.broadcast %cst_156 : f32 to vector<2x8x8xf32>
    %241 = arith.mulf %239, %240 : vector<2x8x8xf32>
    %242 = vector.shape_cast %3 : vector<8x8xf32> to vector<1x8x8xf32>
    %243 = vector.broadcast %242 : vector<1x8x8xf32> to vector<2x8x8xf32>
    %244 = arith.addf %241, %243 : vector<2x8x8xf32>
    %cst_157 = arith.constant dense<0xFF800000> : vector<2x8xf32>
    %245 = vector.multi_reduction <maximumf>, %244, %cst_157 [2] : vector<2x8x8xf32> to vector<2x8xf32>
    %246 = vector.shape_cast %245 : vector<2x8xf32> to vector<2x8x1xf32>
    %247 = vector.broadcast %246 : vector<2x8x1xf32> to vector<2x8x8xf32>
    %248 = arith.subf %244, %247 : vector<2x8x8xf32>
    %249 = math.exp %248 : vector<2x8x8xf32>
    %cst_158 = arith.constant dense<0.000000e+00> : vector<2x8xf32>
    %250 = vector.multi_reduction <add>, %249, %cst_158 [2] : vector<2x8x8xf32> to vector<2x8xf32>
    %251 = vector.shape_cast %250 : vector<2x8xf32> to vector<2x8x1xf32>
    %252 = tpu.reciprocal %251 {approx = true} : vector<2x8x1xf32> -> vector<2x8x1xf32>
    %253 = vector.broadcast %252 : vector<2x8x1xf32> to vector<2x8x8xf32>
    %254 = arith.mulf %249, %253 : vector<2x8x8xf32>
    "tpu.trace_start"() <{level = 10 : i32, message = "bqk,bkd->bqd"}> : () -> ()
    %cst_159 = arith.constant dense<0.000000e+00> : vector<2x8x8xf32>
    %255 = tpu.matmul %254, %238, %cst_159 {dimension_numbers = #tpu.dot_dimension_numbers<[2], [1], [1], [2], [0, 0, 0, 1, 1, 2], [0], [0]>} : vector<2x8x8xf32>, vector<2x8x8xf32>, vector<2x8x8xf32> -> vector<2x8x8xf32>
    "tpu.trace_stop"() : () -> ()
    %256 = vector.shape_cast %255 : vector<2x8x8xf32> to vector<16x8xf32>
    %c0_160 = arith.constant 0 : index
    %c0_161 = arith.constant 0 : index
    %c0_162 = arith.constant 0 : index
    %257 = vector.load %arg20[%c0_160, %c0_161, %c0_162] : memref<4x8x32xf32, #tpu.memory_space<vmem>>, vector<1x8x32xf32>
    %258 = vector.shape_cast %257 : vector<1x8x32xf32> to vector<8x32xf32>
    %cst_163 = arith.constant dense<0.000000e+00> : vector<16x32xf32>
    %259 = tpu.matmul %256, %258, %cst_163 {dimension_numbers = #tpu.dot_dimension_numbers<[1], [0], [0], [1], [0, 0, 1, 1], [], []>} : vector<16x8xf32>, vector<8x32xf32>, vector<16x32xf32> -> vector<16x32xf32>
    %c1_164 = arith.constant 1 : index
    %c0_165 = arith.constant 0 : index
    %c0_166 = arith.constant 0 : index
    %260 = vector.load %arg14[%c1_164, %c0_165, %c0_166] : memref<4x32x8xf32, #tpu.memory_space<vmem>>, vector<1x32x8xf32>
    %261 = vector.shape_cast %260 : vector<1x32x8xf32> to vector<32x8xf32>
    %cst_167 = arith.constant dense<0.000000e+00> : vector<16x8xf32>
    %262 = tpu.matmul %214, %261, %cst_167 {dimension_numbers = #tpu.dot_dimension_numbers<[1], [0], [0], [1], [0, 0, 1, 1], [], []>} : vector<16x32xf32>, vector<32x8xf32>, vector<16x8xf32> -> vector<16x8xf32>
    %c1_168 = arith.constant 1 : index
    %c0_169 = arith.constant 0 : index
    %c0_170 = arith.constant 0 : index
    %263 = vector.load %arg15[%c1_168, %c0_169, %c0_170] : memref<4x1x8xf32, #tpu.memory_space<vmem>>, vector<1x1x8xf32>
    %264 = vector.shape_cast %263 : vector<1x1x8xf32> to vector<1x8xf32>
    %265 = vector.broadcast %264 : vector<1x8xf32> to vector<16x8xf32>
    %266 = arith.addf %262, %265 : vector<16x8xf32>
    %267 = vector.shape_cast %266 : vector<16x8xf32> to vector<2x8x8xf32>
    %c1_171 = arith.constant 1 : index
    %c0_172 = arith.constant 0 : index
    %c0_173 = arith.constant 0 : index
    %268 = vector.load %arg16[%c1_171, %c0_172, %c0_173] : memref<4x32x8xf32, #tpu.memory_space<vmem>>, vector<1x32x8xf32>
    %269 = vector.shape_cast %268 : vector<1x32x8xf32> to vector<32x8xf32>
    %cst_174 = arith.constant dense<0.000000e+00> : vector<16x8xf32>
    %270 = tpu.matmul %1, %269, %cst_174 {dimension_numbers = #tpu.dot_dimension_numbers<[1], [0], [0], [1], [0, 0, 1, 1], [], []>} : vector<16x32xf32>, vector<32x8xf32>, vector<16x8xf32> -> vector<16x8xf32>
    %c1_175 = arith.constant 1 : index
    %c0_176 = arith.constant 0 : index
    %c0_177 = arith.constant 0 : index
    %271 = vector.load %arg17[%c1_175, %c0_176, %c0_177] : memref<4x1x8xf32, #tpu.memory_space<vmem>>, vector<1x1x8xf32>
    %272 = vector.shape_cast %271 : vector<1x1x8xf32> to vector<1x8xf32>
    %273 = vector.broadcast %272 : vector<1x8xf32> to vector<16x8xf32>
    %274 = arith.addf %270, %273 : vector<16x8xf32>
    %275 = vector.shape_cast %274 : vector<16x8xf32> to vector<2x8x8xf32>
    %c1_178 = arith.constant 1 : index
    %c0_179 = arith.constant 0 : index
    %c0_180 = arith.constant 0 : index
    %276 = vector.load %arg18[%c1_178, %c0_179, %c0_180] : memref<4x32x8xf32, #tpu.memory_space<vmem>>, vector<1x32x8xf32>
    %277 = vector.shape_cast %276 : vector<1x32x8xf32> to vector<32x8xf32>
    %cst_181 = arith.constant dense<0.000000e+00> : vector<16x8xf32>
    %278 = tpu.matmul %1, %277, %cst_181 {dimension_numbers = #tpu.dot_dimension_numbers<[1], [0], [0], [1], [0, 0, 1, 1], [], []>} : vector<16x32xf32>, vector<32x8xf32>, vector<16x8xf32> -> vector<16x8xf32>
    %c1_182 = arith.constant 1 : index
    %c0_183 = arith.constant 0 : index
    %c0_184 = arith.constant 0 : index
    %279 = vector.load %arg19[%c1_182, %c0_183, %c0_184] : memref<4x1x8xf32, #tpu.memory_space<vmem>>, vector<1x1x8xf32>
    %280 = vector.shape_cast %279 : vector<1x1x8xf32> to vector<1x8xf32>
    %281 = vector.broadcast %280 : vector<1x8xf32> to vector<16x8xf32>
    %282 = arith.addf %278, %281 : vector<16x8xf32>
    %283 = vector.shape_cast %282 : vector<16x8xf32> to vector<2x8x8xf32>
    "tpu.trace_start"() <{level = 10 : i32, message = "bqd,bkd->bqk"}> : () -> ()
    %cst_185 = arith.constant dense<0.000000e+00> : vector<2x8x8xf32>
    %284 = tpu.matmul %267, %275, %cst_185 {dimension_numbers = #tpu.dot_dimension_numbers<[2], [2], [1], [1], [0, 0, 0, 1, 1, 1], [0], [0]>} : vector<2x8x8xf32>, vector<2x8x8xf32>, vector<2x8x8xf32> -> vector<2x8x8xf32>
    "tpu.trace_stop"() : () -> ()
    %cst_186 = arith.constant 0.353553385 : f32
    %285 = vector.broadcast %cst_186 : f32 to vector<2x8x8xf32>
    %286 = arith.mulf %284, %285 : vector<2x8x8xf32>
    %287 = vector.shape_cast %3 : vector<8x8xf32> to vector<1x8x8xf32>
    %288 = vector.broadcast %287 : vector<1x8x8xf32> to vector<2x8x8xf32>
    %289 = arith.addf %286, %288 : vector<2x8x8xf32>
    %cst_187 = arith.constant dense<0xFF800000> : vector<2x8xf32>
    %290 = vector.multi_reduction <maximumf>, %289, %cst_187 [2] : vector<2x8x8xf32> to vector<2x8xf32>
    %291 = vector.shape_cast %290 : vector<2x8xf32> to vector<2x8x1xf32>
    %292 = vector.broadcast %291 : vector<2x8x1xf32> to vector<2x8x8xf32>
    %293 = arith.subf %289, %292 : vector<2x8x8xf32>
    %294 = math.exp %293 : vector<2x8x8xf32>
    %cst_188 = arith.constant dense<0.000000e+00> : vector<2x8xf32>
    %295 = vector.multi_reduction <add>, %294, %cst_188 [2] : vector<2x8x8xf32> to vector<2x8xf32>
    %296 = vector.shape_cast %295 : vector<2x8xf32> to vector<2x8x1xf32>
    %297 = tpu.reciprocal %296 {approx = true} : vector<2x8x1xf32> -> vector<2x8x1xf32>
    %298 = vector.broadcast %297 : vector<2x8x1xf32> to vector<2x8x8xf32>
    %299 = arith.mulf %294, %298 : vector<2x8x8xf32>
    "tpu.trace_start"() <{level = 10 : i32, message = "bqk,bkd->bqd"}> : () -> ()
    %cst_189 = arith.constant dense<0.000000e+00> : vector<2x8x8xf32>
    %300 = tpu.matmul %299, %283, %cst_189 {dimension_numbers = #tpu.dot_dimension_numbers<[2], [1], [1], [2], [0, 0, 0, 1, 1, 2], [0], [0]>} : vector<2x8x8xf32>, vector<2x8x8xf32>, vector<2x8x8xf32> -> vector<2x8x8xf32>
    "tpu.trace_stop"() : () -> ()
    %301 = vector.shape_cast %300 : vector<2x8x8xf32> to vector<16x8xf32>
    %c1_190 = arith.constant 1 : index
    %c0_191 = arith.constant 0 : index
    %c0_192 = arith.constant 0 : index
    %302 = vector.load %arg20[%c1_190, %c0_191, %c0_192] : memref<4x8x32xf32, #tpu.memory_space<vmem>>, vector<1x8x32xf32>
    %303 = vector.shape_cast %302 : vector<1x8x32xf32> to vector<8x32xf32>
    %cst_193 = arith.constant dense<0.000000e+00> : vector<16x32xf32>
    %304 = tpu.matmul %301, %303, %cst_193 {dimension_numbers = #tpu.dot_dimension_numbers<[1], [0], [0], [1], [0, 0, 1, 1], [], []>} : vector<16x8xf32>, vector<8x32xf32>, vector<16x32xf32> -> vector<16x32xf32>
    %305 = arith.addf %259, %304 : vector<16x32xf32>
    %c2_194 = arith.constant 2 : index
    %c0_195 = arith.constant 0 : index
    %c0_196 = arith.constant 0 : index
    %306 = vector.load %arg14[%c2_194, %c0_195, %c0_196] : memref<4x32x8xf32, #tpu.memory_space<vmem>>, vector<1x32x8xf32>
    %307 = vector.shape_cast %306 : vector<1x32x8xf32> to vector<32x8xf32>
    %cst_197 = arith.constant dense<0.000000e+00> : vector<16x8xf32>
    %308 = tpu.matmul %214, %307, %cst_197 {dimension_numbers = #tpu.dot_dimension_numbers<[1], [0], [0], [1], [0, 0, 1, 1], [], []>} : vector<16x32xf32>, vector<32x8xf32>, vector<16x8xf32> -> vector<16x8xf32>
    %c2_198 = arith.constant 2 : index
    %c0_199 = arith.constant 0 : index
    %c0_200 = arith.constant 0 : index
    %309 = vector.load %arg15[%c2_198, %c0_199, %c0_200] : memref<4x1x8xf32, #tpu.memory_space<vmem>>, vector<1x1x8xf32>
    %310 = vector.shape_cast %309 : vector<1x1x8xf32> to vector<1x8xf32>
    %311 = vector.broadcast %310 : vector<1x8xf32> to vector<16x8xf32>
    %312 = arith.addf %308, %311 : vector<16x8xf32>
    %313 = vector.shape_cast %312 : vector<16x8xf32> to vector<2x8x8xf32>
    %c2_201 = arith.constant 2 : index
    %c0_202 = arith.constant 0 : index
    %c0_203 = arith.constant 0 : index
    %314 = vector.load %arg16[%c2_201, %c0_202, %c0_203] : memref<4x32x8xf32, #tpu.memory_space<vmem>>, vector<1x32x8xf32>
    %315 = vector.shape_cast %314 : vector<1x32x8xf32> to vector<32x8xf32>
    %cst_204 = arith.constant dense<0.000000e+00> : vector<16x8xf32>
    %316 = tpu.matmul %1, %315, %cst_204 {dimension_numbers = #tpu.dot_dimension_numbers<[1], [0], [0], [1], [0, 0, 1, 1], [], []>} : vector<16x32xf32>, vector<32x8xf32>, vector<16x8xf32> -> vector<16x8xf32>
    %c2_205 = arith.constant 2 : index
    %c0_206 = arith.constant 0 : index
    %c0_207 = arith.constant 0 : index
    %317 = vector.load %arg17[%c2_205, %c0_206, %c0_207] : memref<4x1x8xf32, #tpu.memory_space<vmem>>, vector<1x1x8xf32>
    %318 = vector.shape_cast %317 : vector<1x1x8xf32> to vector<1x8xf32>
    %319 = vector.broadcast %318 : vector<1x8xf32> to vector<16x8xf32>
    %320 = arith.addf %316, %319 : vector<16x8xf32>
    %321 = vector.shape_cast %320 : vector<16x8xf32> to vector<2x8x8xf32>
    %c2_208 = arith.constant 2 : index
    %c0_209 = arith.constant 0 : index
    %c0_210 = arith.constant 0 : index
    %322 = vector.load %arg18[%c2_208, %c0_209, %c0_210] : memref<4x32x8xf32, #tpu.memory_space<vmem>>, vector<1x32x8xf32>
    %323 = vector.shape_cast %322 : vector<1x32x8xf32> to vector<32x8xf32>
    %cst_211 = arith.constant dense<0.000000e+00> : vector<16x8xf32>
    %324 = tpu.matmul %1, %323, %cst_211 {dimension_numbers = #tpu.dot_dimension_numbers<[1], [0], [0], [1], [0, 0, 1, 1], [], []>} : vector<16x32xf32>, vector<32x8xf32>, vector<16x8xf32> -> vector<16x8xf32>
    %c2_212 = arith.constant 2 : index
    %c0_213 = arith.constant 0 : index
    %c0_214 = arith.constant 0 : index
    %325 = vector.load %arg19[%c2_212, %c0_213, %c0_214] : memref<4x1x8xf32, #tpu.memory_space<vmem>>, vector<1x1x8xf32>
    %326 = vector.shape_cast %325 : vector<1x1x8xf32> to vector<1x8xf32>
    %327 = vector.broadcast %326 : vector<1x8xf32> to vector<16x8xf32>
    %328 = arith.addf %324, %327 : vector<16x8xf32>
    %329 = vector.shape_cast %328 : vector<16x8xf32> to vector<2x8x8xf32>
    "tpu.trace_start"() <{level = 10 : i32, message = "bqd,bkd->bqk"}> : () -> ()
    %cst_215 = arith.constant dense<0.000000e+00> : vector<2x8x8xf32>
    %330 = tpu.matmul %313, %321, %cst_215 {dimension_numbers = #tpu.dot_dimension_numbers<[2], [2], [1], [1], [0, 0, 0, 1, 1, 1], [0], [0]>} : vector<2x8x8xf32>, vector<2x8x8xf32>, vector<2x8x8xf32> -> vector<2x8x8xf32>
    "tpu.trace_stop"() : () -> ()
    %cst_216 = arith.constant 0.353553385 : f32
    %331 = vector.broadcast %cst_216 : f32 to vector<2x8x8xf32>
    %332 = arith.mulf %330, %331 : vector<2x8x8xf32>
    %333 = vector.shape_cast %3 : vector<8x8xf32> to vector<1x8x8xf32>
    %334 = vector.broadcast %333 : vector<1x8x8xf32> to vector<2x8x8xf32>
    %335 = arith.addf %332, %334 : vector<2x8x8xf32>
    %cst_217 = arith.constant dense<0xFF800000> : vector<2x8xf32>
    %336 = vector.multi_reduction <maximumf>, %335, %cst_217 [2] : vector<2x8x8xf32> to vector<2x8xf32>
    %337 = vector.shape_cast %336 : vector<2x8xf32> to vector<2x8x1xf32>
    %338 = vector.broadcast %337 : vector<2x8x1xf32> to vector<2x8x8xf32>
    %339 = arith.subf %335, %338 : vector<2x8x8xf32>
    %340 = math.exp %339 : vector<2x8x8xf32>
    %cst_218 = arith.constant dense<0.000000e+00> : vector<2x8xf32>
    %341 = vector.multi_reduction <add>, %340, %cst_218 [2] : vector<2x8x8xf32> to vector<2x8xf32>
    %342 = vector.shape_cast %341 : vector<2x8xf32> to vector<2x8x1xf32>
    %343 = tpu.reciprocal %342 {approx = true} : vector<2x8x1xf32> -> vector<2x8x1xf32>
    %344 = vector.broadcast %343 : vector<2x8x1xf32> to vector<2x8x8xf32>
    %345 = arith.mulf %340, %344 : vector<2x8x8xf32>
    "tpu.trace_start"() <{level = 10 : i32, message = "bqk,bkd->bqd"}> : () -> ()
    %cst_219 = arith.constant dense<0.000000e+00> : vector<2x8x8xf32>
    %346 = tpu.matmul %345, %329, %cst_219 {dimension_numbers = #tpu.dot_dimension_numbers<[2], [1], [1], [2], [0, 0, 0, 1, 1, 2], [0], [0]>} : vector<2x8x8xf32>, vector<2x8x8xf32>, vector<2x8x8xf32> -> vector<2x8x8xf32>
    "tpu.trace_stop"() : () -> ()
    %347 = vector.shape_cast %346 : vector<2x8x8xf32> to vector<16x8xf32>
    %c2_220 = arith.constant 2 : index
    %c0_221 = arith.constant 0 : index
    %c0_222 = arith.constant 0 : index
    %348 = vector.load %arg20[%c2_220, %c0_221, %c0_222] : memref<4x8x32xf32, #tpu.memory_space<vmem>>, vector<1x8x32xf32>
    %349 = vector.shape_cast %348 : vector<1x8x32xf32> to vector<8x32xf32>
    %cst_223 = arith.constant dense<0.000000e+00> : vector<16x32xf32>
    %350 = tpu.matmul %347, %349, %cst_223 {dimension_numbers = #tpu.dot_dimension_numbers<[1], [0], [0], [1], [0, 0, 1, 1], [], []>} : vector<16x8xf32>, vector<8x32xf32>, vector<16x32xf32> -> vector<16x32xf32>
    %351 = arith.addf %305, %350 : vector<16x32xf32>
    %c3_224 = arith.constant 3 : index
    %c0_225 = arith.constant 0 : index
    %c0_226 = arith.constant 0 : index
    %352 = vector.load %arg14[%c3_224, %c0_225, %c0_226] : memref<4x32x8xf32, #tpu.memory_space<vmem>>, vector<1x32x8xf32>
    %353 = vector.shape_cast %352 : vector<1x32x8xf32> to vector<32x8xf32>
    %cst_227 = arith.constant dense<0.000000e+00> : vector<16x8xf32>
    %354 = tpu.matmul %214, %353, %cst_227 {dimension_numbers = #tpu.dot_dimension_numbers<[1], [0], [0], [1], [0, 0, 1, 1], [], []>} : vector<16x32xf32>, vector<32x8xf32>, vector<16x8xf32> -> vector<16x8xf32>
    %c3_228 = arith.constant 3 : index
    %c0_229 = arith.constant 0 : index
    %c0_230 = arith.constant 0 : index
    %355 = vector.load %arg15[%c3_228, %c0_229, %c0_230] : memref<4x1x8xf32, #tpu.memory_space<vmem>>, vector<1x1x8xf32>
    %356 = vector.shape_cast %355 : vector<1x1x8xf32> to vector<1x8xf32>
    %357 = vector.broadcast %356 : vector<1x8xf32> to vector<16x8xf32>
    %358 = arith.addf %354, %357 : vector<16x8xf32>
    %359 = vector.shape_cast %358 : vector<16x8xf32> to vector<2x8x8xf32>
    %c3_231 = arith.constant 3 : index
    %c0_232 = arith.constant 0 : index
    %c0_233 = arith.constant 0 : index
    %360 = vector.load %arg16[%c3_231, %c0_232, %c0_233] : memref<4x32x8xf32, #tpu.memory_space<vmem>>, vector<1x32x8xf32>
    %361 = vector.shape_cast %360 : vector<1x32x8xf32> to vector<32x8xf32>
    %cst_234 = arith.constant dense<0.000000e+00> : vector<16x8xf32>
    %362 = tpu.matmul %1, %361, %cst_234 {dimension_numbers = #tpu.dot_dimension_numbers<[1], [0], [0], [1], [0, 0, 1, 1], [], []>} : vector<16x32xf32>, vector<32x8xf32>, vector<16x8xf32> -> vector<16x8xf32>
    %c3_235 = arith.constant 3 : index
    %c0_236 = arith.constant 0 : index
    %c0_237 = arith.constant 0 : index
    %363 = vector.load %arg17[%c3_235, %c0_236, %c0_237] : memref<4x1x8xf32, #tpu.memory_space<vmem>>, vector<1x1x8xf32>
    %364 = vector.shape_cast %363 : vector<1x1x8xf32> to vector<1x8xf32>
    %365 = vector.broadcast %364 : vector<1x8xf32> to vector<16x8xf32>
    %366 = arith.addf %362, %365 : vector<16x8xf32>
    %367 = vector.shape_cast %366 : vector<16x8xf32> to vector<2x8x8xf32>
    %c3_238 = arith.constant 3 : index
    %c0_239 = arith.constant 0 : index
    %c0_240 = arith.constant 0 : index
    %368 = vector.load %arg18[%c3_238, %c0_239, %c0_240] : memref<4x32x8xf32, #tpu.memory_space<vmem>>, vector<1x32x8xf32>
    %369 = vector.shape_cast %368 : vector<1x32x8xf32> to vector<32x8xf32>
    %cst_241 = arith.constant dense<0.000000e+00> : vector<16x8xf32>
    %370 = tpu.matmul %1, %369, %cst_241 {dimension_numbers = #tpu.dot_dimension_numbers<[1], [0], [0], [1], [0, 0, 1, 1], [], []>} : vector<16x32xf32>, vector<32x8xf32>, vector<16x8xf32> -> vector<16x8xf32>
    %c3_242 = arith.constant 3 : index
    %c0_243 = arith.constant 0 : index
    %c0_244 = arith.constant 0 : index
    %371 = vector.load %arg19[%c3_242, %c0_243, %c0_244] : memref<4x1x8xf32, #tpu.memory_space<vmem>>, vector<1x1x8xf32>
    %372 = vector.shape_cast %371 : vector<1x1x8xf32> to vector<1x8xf32>
    %373 = vector.broadcast %372 : vector<1x8xf32> to vector<16x8xf32>
    %374 = arith.addf %370, %373 : vector<16x8xf32>
    %375 = vector.shape_cast %374 : vector<16x8xf32> to vector<2x8x8xf32>
    "tpu.trace_start"() <{level = 10 : i32, message = "bqd,bkd->bqk"}> : () -> ()
    %cst_245 = arith.constant dense<0.000000e+00> : vector<2x8x8xf32>
    %376 = tpu.matmul %359, %367, %cst_245 {dimension_numbers = #tpu.dot_dimension_numbers<[2], [2], [1], [1], [0, 0, 0, 1, 1, 1], [0], [0]>} : vector<2x8x8xf32>, vector<2x8x8xf32>, vector<2x8x8xf32> -> vector<2x8x8xf32>
    "tpu.trace_stop"() : () -> ()
    %cst_246 = arith.constant 0.353553385 : f32
    %377 = vector.broadcast %cst_246 : f32 to vector<2x8x8xf32>
    %378 = arith.mulf %376, %377 : vector<2x8x8xf32>
    %379 = vector.shape_cast %3 : vector<8x8xf32> to vector<1x8x8xf32>
    %380 = vector.broadcast %379 : vector<1x8x8xf32> to vector<2x8x8xf32>
    %381 = arith.addf %378, %380 : vector<2x8x8xf32>
    %cst_247 = arith.constant dense<0xFF800000> : vector<2x8xf32>
    %382 = vector.multi_reduction <maximumf>, %381, %cst_247 [2] : vector<2x8x8xf32> to vector<2x8xf32>
    %383 = vector.shape_cast %382 : vector<2x8xf32> to vector<2x8x1xf32>
    %384 = vector.broadcast %383 : vector<2x8x1xf32> to vector<2x8x8xf32>
    %385 = arith.subf %381, %384 : vector<2x8x8xf32>
    %386 = math.exp %385 : vector<2x8x8xf32>
    %cst_248 = arith.constant dense<0.000000e+00> : vector<2x8xf32>
    %387 = vector.multi_reduction <add>, %386, %cst_248 [2] : vector<2x8x8xf32> to vector<2x8xf32>
    %388 = vector.shape_cast %387 : vector<2x8xf32> to vector<2x8x1xf32>
    %389 = tpu.reciprocal %388 {approx = true} : vector<2x8x1xf32> -> vector<2x8x1xf32>
    %390 = vector.broadcast %389 : vector<2x8x1xf32> to vector<2x8x8xf32>
    %391 = arith.mulf %386, %390 : vector<2x8x8xf32>
    "tpu.trace_start"() <{level = 10 : i32, message = "bqk,bkd->bqd"}> : () -> ()
    %cst_249 = arith.constant dense<0.000000e+00> : vector<2x8x8xf32>
    %392 = tpu.matmul %391, %375, %cst_249 {dimension_numbers = #tpu.dot_dimension_numbers<[2], [1], [1], [2], [0, 0, 0, 1, 1, 2], [0], [0]>} : vector<2x8x8xf32>, vector<2x8x8xf32>, vector<2x8x8xf32> -> vector<2x8x8xf32>
    "tpu.trace_stop"() : () -> ()
    %393 = vector.shape_cast %392 : vector<2x8x8xf32> to vector<16x8xf32>
    %c3_250 = arith.constant 3 : index
    %c0_251 = arith.constant 0 : index
    %c0_252 = arith.constant 0 : index
    %394 = vector.load %arg20[%c3_250, %c0_251, %c0_252] : memref<4x8x32xf32, #tpu.memory_space<vmem>>, vector<1x8x32xf32>
    %395 = vector.shape_cast %394 : vector<1x8x32xf32> to vector<8x32xf32>
    %cst_253 = arith.constant dense<0.000000e+00> : vector<16x32xf32>
    %396 = tpu.matmul %393, %395, %cst_253 {dimension_numbers = #tpu.dot_dimension_numbers<[1], [0], [0], [1], [0, 0, 1, 1], [], []>} : vector<16x8xf32>, vector<8x32xf32>, vector<16x32xf32> -> vector<16x32xf32>
    %397 = arith.addf %351, %396 : vector<16x32xf32>
    %c0_254 = arith.constant 0 : index
    %c0_255 = arith.constant 0 : index
    %398 = vector.load %arg21[%c0_254, %c0_255] : memref<1x32xf32, #tpu.memory_space<vmem>>, vector<1x32xf32>
    %399 = vector.broadcast %398 : vector<1x32xf32> to vector<16x32xf32>
    %400 = arith.addf %397, %399 : vector<16x32xf32>
    %401 = arith.addf %214, %400 : vector<16x32xf32>
    %c0_256 = arith.constant 0 : index
    %c0_257 = arith.constant 0 : index
    %402 = vector.load %arg22[%c0_256, %c0_257] : memref<1x32xf32, #tpu.memory_space<vmem>>, vector<1x32xf32>
    %c0_258 = arith.constant 0 : index
    %c0_259 = arith.constant 0 : index
    %403 = vector.load %arg23[%c0_258, %c0_259] : memref<1x32xf32, #tpu.memory_space<vmem>>, vector<1x32xf32>
    %cst_260 = arith.constant dense<0.000000e+00> : vector<16xf32>
    %404 = vector.multi_reduction <add>, %401, %cst_260 [1] : vector<16x32xf32> to vector<16xf32>
    %405 = vector.shape_cast %404 : vector<16xf32> to vector<16x1xf32>
    %cst_261 = arith.constant 3.200000e+01 : f32
    %406 = vector.broadcast %cst_261 : f32 to vector<16x1xf32>
    %407 = arith.divf %405, %406 : vector<16x1xf32>
    %408 = vector.broadcast %407 : vector<16x1xf32> to vector<16x32xf32>
    %409 = arith.subf %401, %408 : vector<16x32xf32>
    %410 = arith.mulf %409, %409 : vector<16x32xf32>
    %cst_262 = arith.constant dense<0.000000e+00> : vector<16xf32>
    %411 = vector.multi_reduction <add>, %410, %cst_262 [1] : vector<16x32xf32> to vector<16xf32>
    %412 = vector.shape_cast %411 : vector<16xf32> to vector<16x1xf32>
    %cst_263 = arith.constant 3.200000e+01 : f32
    %413 = vector.broadcast %cst_263 : f32 to vector<16x1xf32>
    %414 = arith.divf %412, %413 : vector<16x1xf32>
    %415 = vector.broadcast %407 : vector<16x1xf32> to vector<16x32xf32>
    %416 = arith.subf %401, %415 : vector<16x32xf32>
    %cst_264 = arith.constant 9.99999974E-6 : f32
    %417 = vector.broadcast %cst_264 : f32 to vector<16x1xf32>
    %418 = arith.addf %414, %417 : vector<16x1xf32>
    %419 = math.rsqrt %418 : vector<16x1xf32>
    %420 = vector.broadcast %419 : vector<16x1xf32> to vector<16x32xf32>
    %421 = arith.mulf %416, %420 : vector<16x32xf32>
    %422 = vector.broadcast %402 : vector<1x32xf32> to vector<16x32xf32>
    %423 = arith.mulf %421, %422 : vector<16x32xf32>
    %424 = vector.broadcast %403 : vector<1x32xf32> to vector<16x32xf32>
    %425 = arith.addf %423, %424 : vector<16x32xf32>
    %c0_265 = arith.constant 0 : index
    %c0_266 = arith.constant 0 : index
    %426 = vector.load %arg24[%c0_265, %c0_266] : memref<32x64xf32, #tpu.memory_space<vmem>>, vector<32x64xf32>
    %cst_267 = arith.constant dense<0.000000e+00> : vector<16x64xf32>
    %427 = tpu.matmul %425, %426, %cst_267 {dimension_numbers = #tpu.dot_dimension_numbers<[1], [0], [0], [1], [0, 0, 1, 1], [], []>} : vector<16x32xf32>, vector<32x64xf32>, vector<16x64xf32> -> vector<16x64xf32>
    %c0_268 = arith.constant 0 : index
    %c0_269 = arith.constant 0 : index
    %428 = vector.load %arg25[%c0_268, %c0_269] : memref<1x64xf32, #tpu.memory_space<vmem>>, vector<1x64xf32>
    %429 = vector.broadcast %428 : vector<1x64xf32> to vector<16x64xf32>
    %430 = arith.addf %427, %429 : vector<16x64xf32>
    %cst_270 = arith.constant 0.000000e+00 : f32
    %431 = vector.broadcast %cst_270 : f32 to vector<16x64xf32>
    %432 = arith.maximumf %430, %431 : vector<16x64xf32>
    %c0_271 = arith.constant 0 : index
    %c0_272 = arith.constant 0 : index
    %433 = vector.load %arg26[%c0_271, %c0_272] : memref<64x32xf32, #tpu.memory_space<vmem>>, vector<64x32xf32>
    %cst_273 = arith.constant dense<0.000000e+00> : vector<16x32xf32>
    %434 = tpu.matmul %432, %433, %cst_273 {dimension_numbers = #tpu.dot_dimension_numbers<[1], [0], [0], [1], [0, 0, 1, 1], [], []>} : vector<16x64xf32>, vector<64x32xf32>, vector<16x32xf32> -> vector<16x32xf32>
    %c0_274 = arith.constant 0 : index
    %c0_275 = arith.constant 0 : index
    %435 = vector.load %arg27[%c0_274, %c0_275] : memref<1x32xf32, #tpu.memory_space<vmem>>, vector<1x32xf32>
    %436 = vector.broadcast %435 : vector<1x32xf32> to vector<16x32xf32>
    %437 = arith.addf %434, %436 : vector<16x32xf32>
    %438 = arith.addf %425, %437 : vector<16x32xf32>
    %c0_276 = arith.constant 0 : index
    %c0_277 = arith.constant 0 : index
    %439 = vector.load %arg28[%c0_276, %c0_277] : memref<1x32xf32, #tpu.memory_space<vmem>>, vector<1x32xf32>
    %c0_278 = arith.constant 0 : index
    %c0_279 = arith.constant 0 : index
    %440 = vector.load %arg29[%c0_278, %c0_279] : memref<1x32xf32, #tpu.memory_space<vmem>>, vector<1x32xf32>
    %cst_280 = arith.constant dense<0.000000e+00> : vector<16xf32>
    %441 = vector.multi_reduction <add>, %438, %cst_280 [1] : vector<16x32xf32> to vector<16xf32>
    %442 = vector.shape_cast %441 : vector<16xf32> to vector<16x1xf32>
    %cst_281 = arith.constant 3.200000e+01 : f32
    %443 = vector.broadcast %cst_281 : f32 to vector<16x1xf32>
    %444 = arith.divf %442, %443 : vector<16x1xf32>
    %445 = vector.broadcast %444 : vector<16x1xf32> to vector<16x32xf32>
    %446 = arith.subf %438, %445 : vector<16x32xf32>
    %447 = arith.mulf %446, %446 : vector<16x32xf32>
    %cst_282 = arith.constant dense<0.000000e+00> : vector<16xf32>
    %448 = vector.multi_reduction <add>, %447, %cst_282 [1] : vector<16x32xf32> to vector<16xf32>
    %449 = vector.shape_cast %448 : vector<16xf32> to vector<16x1xf32>
    %cst_283 = arith.constant 3.200000e+01 : f32
    %450 = vector.broadcast %cst_283 : f32 to vector<16x1xf32>
    %451 = arith.divf %449, %450 : vector<16x1xf32>
    %452 = vector.broadcast %444 : vector<16x1xf32> to vector<16x32xf32>
    %453 = arith.subf %438, %452 : vector<16x32xf32>
    %cst_284 = arith.constant 9.99999974E-6 : f32
    %454 = vector.broadcast %cst_284 : f32 to vector<16x1xf32>
    %455 = arith.addf %451, %454 : vector<16x1xf32>
    %456 = math.rsqrt %455 : vector<16x1xf32>
    %457 = vector.broadcast %456 : vector<16x1xf32> to vector<16x32xf32>
    %458 = arith.mulf %453, %457 : vector<16x32xf32>
    %459 = vector.broadcast %439 : vector<1x32xf32> to vector<16x32xf32>
    %460 = arith.mulf %458, %459 : vector<16x32xf32>
    %461 = vector.broadcast %440 : vector<1x32xf32> to vector<16x32xf32>
    %462 = arith.addf %460, %461 : vector<16x32xf32>
    %c0_285 = arith.constant 0 : index
    %c0_286 = arith.constant 0 : index
    %463 = vector.load %arg30[%c0_285, %c0_286] : memref<16x32xf32, #tpu.memory_space<vmem>>, vector<16x32xf32>
    tpu.vector_store %arg30[%c0_285, %c0_286], %462 {strides = array<i32>} : memref<16x32xf32, #tpu.memory_space<vmem>>, vector<16x32xf32>,
    return
  }
}

</mosaic_0001>

<bundles_post_ra>
// kernel: tpu_custom_call.1
= control target key start
LH: loop header
LB: loop body
LE: loop exit
PB: predicated region body
PF: predicated region fallthrough
CT: control target
= control target key end

     0   :  { %s2887_s6 = smov 1   ;;  %s2888_s10 = smov 2   ;;  %s3522_s0 = inlined_call_operand.smem [shape: u32[31], index: -1, kind: input, shape index: {}] }
   0x1   :  { %s2929_s5 = sld [smem:[%s3522_s0]]   ;;  %s2889_s14 = smov 3  }
   0x2   :  { %s2934_s9 = sld [smem:[%s3522_s0 + %s2887_s6]]   ;;  %s2890_s18 = smov 4  }
   0x3   :  { %s2939_s13 = sld [smem:[%s3522_s0 + %s2888_s10]]   ;;  %s2891_s22 = smov 5  }
   0x4   :  { %s2944_s17 = sld [smem:[%s3522_s0 + %s2889_s14]]   ;;  %s2892_s26 = smov 6  }
   0x5   :  { %s2949_s21 = sld [smem:[%s3522_s0 + %s2890_s18]]   ;;  %s2893_s30 = smov 7  }
   0x6   :  { %s2954_s25 = sld [smem:[%s3522_s0 + %s2891_s22]]   ;;  %s2894_s4 = smov 8  }
   0x7   :  { %s2959_s29 = sld [smem:[%s3522_s0 + %s2892_s26]]   ;;  %s2895_s10 = smov 9  }
   0x8   :  { %s2964_s3 = sld [smem:[%s3522_s0 + %s2893_s30]]   ;;  %s2896_s15 = smov 10  }
   0x9   :  { %s2969_s8 = sld [smem:[%s3522_s0 + %s2894_s4]]   ;;  %s2897_s20 = smov 11  }
   0xa   :  { %3530 = sst [smem:[#allocation5_spill]] %s2944_s17  ;;  %s2898_s26 = smov 12  }
   0xb   :  { %s2974_s14 = sld [smem:[%s3522_s0 + %s2895_s10]]   ;;  %s2899_s1 = smov 13  }
   0xc   :  { %s2979_s19 = sld [smem:[%s3522_s0 + %s2896_s15]]   ;;  %s2900_s7 = smov 14  }
   0xd   :  { %s2984_s24 = sld [smem:[%s3522_s0 + %s2897_s20]]   ;;  %s2901_s15 = smov 15  }
   0xe   :  { %s2989_s30 = sld [smem:[%s3522_s0 + %s2898_s26]]   ;;  %s2902_s22 = smov 16  }
   0xf   :  { %s2994_s6 = sld [smem:[%s3522_s0 + %s2899_s1]]   ;;  %s2903_s28 = smov 17  }
  0x10   :  { %s2999_s12 = sld [smem:[%s3522_s0 + %s2900_s7]]   ;;  %s2904_s7 = smov 18  }
  0x11   :  { %s3004_s20 = sld [smem:[%s3522_s0 + %s2901_s15]]   ;;  %s2905_s15 = smov 19  }
  0x12   :  { %s3009_s27 = sld [smem:[%s3522_s0 + %s2902_s22]]   ;;  %s2906_s22 = smov 20  }
  0x13   :  { %s3014_s4 = sld [smem:[%s3522_s0 + %s2903_s28]]   ;;  %s2907_s28 = smov 21  }
  0x14   :  { %s3019_s17 = sld [smem:[%s3522_s0 + %s2904_s7]]   ;;  %s2908_s7 = smov 22  }
  0x15   :  { %3531 = sst [smem:[#allocation6_spill]] %s2994_s6 }
  0x16   :  { %s3029_s6 = sld [smem:[%s3522_s0 + %s2906_s22]]   ;;  %s2910_s22 = smov 24  }
  0x17   :  { %3532 = sst [smem:[#allocation7_spill]] %s3004_s20 }
  0x18   :  { %s3024_s20 = sld [smem:[%s3522_s0 + %s2905_s15]]   ;;  %s2909_s15 = smov 23  }
  0x19   :  { %3533 = sst [smem:[#allocation8_spill]] %s3014_s4 }
  0x1a   :  { %3534 = sst [smem:[#allocation9_spill]] %s3019_s17 }
  0x1b   :  { %s3034_s4 = sld [smem:[%s3522_s0 + %s2907_s28]]   ;;  %s2911_s28 = smov 25  }
  0x1c   :  { %3536 = sst [smem:[#allocation11_spill]] %s3029_s6 }
  0x1d   :  { %s3039_s17 = sld [smem:[%s3522_s0 + %s2908_s7]]   ;;  %s2912_s7 = smov 26  }
  0x1e   :  { %3535 = sst [smem:[#allocation10_spill]] %s3024_s20 }
  0x1f   :  { %s3044_s20 = sld [smem:[%s3522_s0 + %s2909_s15]]   ;;  %s2913_s15 = smov 27  }
  0x20   :  { %s3049_s6 = sld [smem:[%s3522_s0 + %s2910_s22]]   ;;  %s2914_s22 = smov 28  }
  0x21   :  { %3537 = sst [smem:[#allocation12_spill]] %s3034_s4 }
  0x22   :  { %s3054_s4 = sld [smem:[%s3522_s0 + %s2911_s28]]   ;;  %s2915_s28 = smov 29  }
  0x23   :  { %3538 = sst [smem:[#allocation13_spill]] %s3039_s17 }
  0x24   :  { %s3059_s17 = sld [smem:[%s3522_s0 + %s2912_s7]]   ;;  %s2916_s7 = smov 30  }
  0x25   :  { %3539 = sst [smem:[#allocation14_spill]] %s3044_s20 }
  0x26   :  { %3540 = sst [smem:[#allocation15_spill]] %s3049_s6 }
  0x27   :  { %s3064_s20 = sld [smem:[%s3522_s0 + %s2913_s15]]  }
  0x28   :  { %3541 = sst [smem:[#allocation16_spill]] %s3054_s4 }
  0x29   :  { %s3069_s6 = sld [smem:[%s3522_s0 + %s2914_s22]]  }
  0x2a   :  { %3542 = sst [smem:[#allocation17_spill]] %s3059_s17 }
  0x2b   :  { %s3074_s4 = sld [smem:[%s3522_s0 + %s2915_s28]]  }
  0x2c   :  { %s3079_s17 = sld [smem:[%s3522_s0 + %s2916_s7]]  }
  0x2d   :  { %v174_v0 = vld [vmem:[%s2959_s29 + $0x18] sm:$0xff]  ;;  %v173_v1 = vld [vmem:[%s2959_s29 + $0x10] sm:$0xff]  ;;  %v172_v4 = vld [vmem:[%s2959_s29 + $0x8] sm:$0xff]  ;;  %vm141_vm0 = vcmask 261120  }
  0x2e   :  { %v136_v2 = vld [vmem:[%s2949_s21 + $0x18] sm:$0xff]  ;;  %191 = vmatpush.msra.mxu1 %v174_v0  ;;  %v135_v3 = vld [vmem:[%s2949_s21 + $0x10] sm:$0xff]  ;;  %v171_v5 = vld [vmem:[%s2959_s29] sm:$0xff] }
  0x2f   :  { %160 = vmatpush.msra.mxu0 %v136_v2  ;;  %v134_v6 = vld [vmem:[%s2949_s21 + $0x8] sm:$0xff]  ;;  %v3089_v7 = vld [vmem:[%s2929_s5] sm:$0xff] }
  0x30   :  { %192 = vmatpush.msra.mxu1 %v173_v1  ;;  %v133_v8 = vld [vmem:[%s2949_s21] sm:$0xff]  ;;  %v3097_v9 = vld [vmem:[%s2929_s5 + $0x8] sm:$0xff] }
  0x31   :  { %161 = vmatpush.msra.mxu0 %v135_v3 }
  0x32   :  { %193 = vmatpush.msra.mxu1 %v172_v4 }
  0x33   :  { %162 = vmatpush.msra.mxu0 %v134_v6 }
  0x34   :  { %194 = vmatpush.msra.mxu1 %v171_v5 }
  0x35   :  { %163 = vmatpush.msra.mxu0 %v133_v8  ;;  %2505 = vmatmul.msk.f32.vlgmr.msra.gmra.mxu1 %vm141_vm0, %v3089_v7 }
  0x36   :  { %2503 = vmatmul.msk.f32.vlgmr.msra.gmra.mxu0 %vm141_vm0, %v3089_v7 }
  0x37   :  { %66 = vsyncpa [#allocation3], 0  ;;  %v2750_v10 = vld [vmem:[%s2964_s3] ss:$0 sm:$0xff]  ;;  %vm233_vm1 = vcmask 64512   ;;  %v205_v20 = vld [vmem:[%s2969_s8 + $0x18] sm:$0xff] }
  0x38   :  { %v2749_v11 = vld [vmem:[%s2954_s25] ss:$0 sm:$0xff]  ;;  %v204_v21 = vld [vmem:[%s2969_s8 + $0x10] sm:$0xff]  ;;  %222 = vmatpush.msra.mxu2 %v205_v20  ;;  %v203_v22 = vld [vmem:[%s2969_s8 + $0x8] sm:$0xff]  ;;  %s3543_s0 = sld [smem:[#allocation6_spill]]  ;;  %vm2365_vm15 = vcmask 523264  }
  0x39   :  { %v202_v23 = vld [vmem:[%s2969_s8] sm:$0xff]  ;;  %v2525_v33 = vld [vmem:[%s2959_s29 + $0x38] sm:$0xff]  ;;  %v2524_v34 = vld [vmem:[%s2959_s29 + $0x30] sm:$0xff]  ;;  %s3544_s5 = sld [smem:[#allocation8_spill]]  ;;  %s2877_s15 = scalar_lea.hbm %s3079_s17, 16 }
  0x3a   :  { %223 = vmatpush.msra.mxu2 %v204_v21  ;;  %v3118_v25 = vld [vmem:[%s2939_s13] sm:$0xff]  ;;  %v2523_v35 = vld [vmem:[%s2959_s29 + $0x28] sm:$0xff]  ;;  %v2518_v37 = vld [vmem:[%s2949_s21 + $0x38] sm:$0xff]  ;;  %s3546_s13 = sld [smem:[#allocation5_spill]] }
  0x3b   :  { %v2522_v36 = vld [vmem:[%s2959_s29 + $0x20] sm:$0xff]  ;;  %381 = vmatpush.msrb.mxu1 %v2518_v37  ;;  %v2517_v38 = vld [vmem:[%s2949_s21 + $0x30] sm:$0xff]  ;;  %v2516_v39 = vld [vmem:[%s2949_s21 + $0x28] sm:$0xff] }
  0x3c   :  { %224 = vmatpush.msra.mxu2 %v203_v22  ;;  %v2515_v40 = vld [vmem:[%s2949_s21 + $0x20] sm:$0xff]  ;;  %v2531_v22 = vld [vmem:[%s2969_s8 + $0x30] sm:$0xff] }
  0x3d   :  { %2506 = vmatmul.msk.f32.gmra.mxu1 %vm141_vm0, %v3097_v9  ;;  %v2751_v51 = vld [vmem:[%s2974_s14] ss:$0 sm:$0xff]  ;;  %v2752_v56 = vld [vmem:[%s2964_s3 + $0x1] ss:$0 sm:$0xff] }
  0x3e   :  { %2504 = vmatmul.msk.f32.gmra.mxu0 %vm141_vm0, %v3097_v9  ;;  %225 = vmatpush.msra.mxu2 %v202_v23  ;;  %v2753_v4 = vld [vmem:[%s2954_s25 + $0x1] ss:$0 sm:$0xff]  ;;  %v2530_v23 = vld [vmem:[%s2969_s8 + $0x28] sm:$0xff] }
  0x3f   :  { %2507 = vmatmul.msk.f32.vlgmr.msra.gmra.mxu2 %vm141_vm0, %v3089_v7  ;;  %382 = vmatpush.msrb.mxu1 %v2517_v38 }
  0x40   :  { %414 = vmatpush.msrb.mxu2 %v2525_v33 }
  0x41   :  { %383 = vmatpush.msrb.mxu1 %v2516_v39 }
  0x42   :  { %415 = vmatpush.msrb.mxu2 %v2524_v34 }
  0x43   :  { %384 = vmatpush.msrb.mxu1 %v2515_v40 }
  0x44   :  { %416 = vmatpush.msrb.mxu2 %v2523_v35 }
  0x45   :  { %2520 = vmatmul.msk.f32.vlgmr.msrb.gmra.mxu1 %vm141_vm0, %v3089_v7 }
  0x46   :  { %417 = vmatpush.msrb.mxu2 %v2522_v36  ;;  %v2754_v36 = vld [vmem:[%s2974_s14 + $0x1] ss:$0 sm:$0xff] }
  0x47   :  { %2508 = vmatmul.msk.f32.gmra.mxu2 %vm141_vm0, %v3097_v9 }
  0x4d   :  { %2521 = vmatmul.msk.f32.gmra.mxu1 %vm141_vm0, %v3097_v9 }
  0x4f   :  { %2527 = vmatmul.msk.f32.vlgmr.msrb.gmra.mxu2 %vm141_vm0, %v3089_v7 }
  0x57   :  { %2528 = vmatmul.msk.f32.gmra.mxu2 %vm141_vm0, %v3097_v9 }
  0xb2   :  { %v196_v12 = vpop.f32.mrf.mxu1 }
  0xb3   :  { %v165_v13 = vpop.f32.mrf.mxu0  ;;  %v197_v14 = vadd.f32 %v2750_v10, %v196_v12  ;;  %v2532_v12 = vld [vmem:[%s2969_s8 + $0x38] sm:$0xff] }
  0xb4   :  { %v166_v15 = vadd.f32 %v2749_v11, %v165_v13 }
  0xb5   :  { %2509 = vmatpush.xpose.msk.msra.mxu3 %vm233_vm1, %v197_v14 }
  0xb8   :  { %2510 = vmatmul.msk.f32.vlgmr.msra.gmra.mxu3 %vm233_vm1, %v166_v15 }
  0xba   :  { %v199_v16 = vpop.f32.mrf.mxu1 }
  0xbb   :  { %v168_v17 = vpop.f32.mrf.mxu0  ;;  %v200_v18 = vadd.f32 %v2750_v10, %v199_v16  ;;  %v358_v10 = vld [vmem:[%s2979_s19] sm:$0xff] }
  0xbc   :  { %v169_v19 = vadd.f32 %v2749_v11, %v168_v17 }
  0xbd   :  { %2511 = vmatpush.xpose.msk.msrb.mxu3 %vm233_vm1, %v200_v18 }
  0xc0   :  { %2512 = vmatmul.msk.f32.vlgmr.msrb.gmra.mxu3 %vm233_vm1, %v169_v19 }
  0xc2   :  { %v227_v52 = vpop.f32.mrf.mxu2  ;;  %v386_v3 = vpop.f32.mrf.mxu1 }
  0xc3   :  { %v228_v53 = vadd.f32 %v2751_v51, %v227_v52  ;;  %v387_v5 = vadd.f32 %v2753_v4, %v386_v3 }
  0xc5   :  { %330 = vmatpush.msra.mxu3 %v228_v53 }
  0xc7   :  { %447 = vmatpush.msrb.mxu3 %v2532_v12 }
  0xc9   :  { %448 = vmatpush.msrb.mxu3 %v2531_v22 }
  0xca   :  { %v230_v54 = vpop.f32.mrf.mxu2  ;;  %v389_v6 = vpop.f32.mrf.mxu1 }
  0xcb   :  { %v231_v55 = vadd.f32 %v2751_v51, %v230_v54  ;;  %v390_v8 = vadd.f32 %v2753_v4, %v389_v6  ;;  %449 = vmatpush.msrb.mxu3 %v2530_v23  ;;  %v2563_v6 = vld [vmem:[%s2969_s8 + $0x50] sm:$0xff] }
  0xcd   :  { %353 = vmatpush.msrb.mxu0 %v231_v55  ;;  %v2542_v55 = vld [vmem:[%s2979_s19 + $0x8] sm:$0xff] }
  0xd2   :  { %v419_v57 = vpop.f32.mrf.mxu2 }
  0xd3   :  { %v420_v58 = vadd.f32 %v2752_v56, %v419_v57 }
  0xd5   :  { %2536 = vmatpush.xpose.msk.msra.mxu0 %vm233_vm1, %v420_v58  ;;  %v2755_v58 = vld [vmem:[%s2964_s3 + $0x2] ss:$0 sm:$0xff] }
  0xda   :  { %v422_v63 = vpop.f32.mrf.mxu2 }
  0xdb   :  { %v423_v1 = vadd.f32 %v2752_v56, %v422_v63 }
 0x13b   :  { %v257_v24 = vpop.f32.mrf.mxu3 }
 0x13c   :  { %v286_v26 = vmul.f32 0.35355338, %v257_v24  ;;  %v2529_v24 = vld [vmem:[%s2969_s8 + $0x20] sm:$0xff] }
 0x13d   :  { %450 = vmatpush.msrb.mxu3 %v2529_v24 }
 0x13e   :  { %v288_v27 = vadd.f32 %v286_v26, %v3118_v25 }
 0x140   :  { %v290_v28 = vsel %vm233_vm1, %v288_v27, -inf }
 0x141   :  { %291 = vmax.xlane.f32.xlu1 %v290_v28 }
 0x143   :  { %v283_v29 = vpop.f32.mrf.mxu3 }
 0x144   :  { %v287_v30 = vmul.f32 0.35355338, %v283_v29 }
 0x146   :  { %v289_v31 = vadd.f32 %v287_v30, %v3118_v25 }
 0x148   :  { %v293_v32 = vsel %vm233_vm1, %v289_v31, -inf }
 0x149   :  { %294 = vmax.xlane.f32.xlu0 %v293_v32 }
 0x1b4   :  { %v292_v41 = vpop.xlane.xlu1 %291 }
 0x1b5   :  { %v296_v42 = vsub.f32 %v288_v27, %v292_v41  ;;  %v2557_v41 = vld [vmem:[%s2959_s29 + $0x58] sm:$0xff] }
 0x1b7   :  { %v298_v43 = vmul.f32 1.442695, %v296_v42  ;;  %v2556_v42 = vld [vmem:[%s2959_s29 + $0x50] sm:$0xff] }
 0x1b9   :  { %2783 = vpow2.f32 %v298_v43  ;;  %v2555_v43 = vld [vmem:[%s2959_s29 + $0x48] sm:$0xff] }
 0x1bc   :  { %v295_v44 = vpop.xlane.xlu0 %294 }
 0x1bd   :  { %v297_v45 = vsub.f32 %v289_v31, %v295_v44  ;;  %v2554_v44 = vld [vmem:[%s2959_s29 + $0x40] sm:$0xff] }
 0x1bf   :  { %v2784_v46 = vpop.eup %2783  ;;  %v300_v47 = vmul.f32 1.442695, %v297_v45  ;;  %v2550_v45 = vld [vmem:[%s2949_s21 + $0x58] sm:$0xff] }
 0x1c0   :  { %v302_v48 = vsel %vm233_vm1, %v2784_v46, 0.0 }
 0x1c1   :  { %2785 = vpow2.f32 %v300_v47  ;;  %303 = vadd.xlane.f32.xlu1 %v302_v48  ;;  %v2548_v47 = vld [vmem:[%s2949_s21 + $0x48] sm:$0xff]  ;;  %v2547_v48 = vld [vmem:[%s2949_s21 + $0x40] sm:$0xff] }
 0x1c7   :  { %v2786_v49 = vpop.eup %2785 }
 0x1c8   :  { %v305_v50 = vsel %vm233_vm1, %v2786_v49, 0.0 }
 0x1c9   :  { %306 = vadd.xlane.f32.xlu0 %v305_v50 }
 0x234   :  { %v304_v59 = vpop.xlane.xlu1 %303 }
 0x235   :  { %2787 = vrcp.f32 %v304_v59  ;;  %v2756_v59 = vld [vmem:[%s2954_s25 + $0x2] ss:$0 sm:$0xff] }
 0x23b   :  { %v2788_v60 = vpop.eup %2787 }
 0x23c   :  { %v310_v61 = vmul.f32 %v2788_v60, %v2784_v46  ;;  %v307_v62 = vpop.xlane.xlu0 %306  ;;  %v2549_v46 = vld [vmem:[%s2949_s21 + $0x50] sm:$0xff] }
 0x23d   :  { %2789 = vrcp.f32 %v307_v62 }
 0x23e   :  { %2513 = vmatmul.msk.f32.vlgmr.msra.gmra.mxu3 %vm233_vm1, %v310_v61 }
 0x23f   :  { %605 = vmatpush.msra.mxu3 %v2542_v55 }
 0x243   :  { %v2790_v0 = vpop.eup %2789 }
 0x244   :  { %v311_v2 = vmul.f32 %v2790_v0, %v2786_v49 }
 0x246   :  { %2514 = vmatmul.msk.f32.vlgmr.msrb.gmra.mxu0 %vm233_vm1, %v311_v2  ;;  %2534 = vmatmul.msk.f32.vlgmr.msrb.gmra.mxu3 %vm141_vm0, %v3089_v7 }
 0x247   :  { %2538 = vmatpush.xpose.msk.msrb.mxu0 %vm233_vm1, %v423_v1 }
 0x24e   :  { %2537 = vmatmul.msk.f32.vlgmr.msra.gmra.mxu0 %vm233_vm1, %v387_v5  ;;  %2535 = vmatmul.msk.f32.gmra.mxu3 %vm141_vm0, %v3097_v9  ;;  %v2564_v5 = vld [vmem:[%s2969_s8 + $0x58] sm:$0xff] }
 0x24f   :  { %634 = vmatpush.msra.mxu0 %v358_v10  ;;  %730 = vmatpush.msrb.mxu3 %v2564_v5  ;;  %v2561_v10 = vld [vmem:[%s2969_s8 + $0x40] sm:$0xff] }
 0x251   :  { %731 = vmatpush.msrb.mxu3 %v2563_v6 }
 0x256   :  { %2539 = vmatmul.msk.f32.vlgmr.msrb.gmra.mxu0 %vm233_vm1, %v390_v8  ;;  %v2562_v8 = vld [vmem:[%s2969_s8 + $0x48] sm:$0xff] }
 0x257   :  { %732 = vmatpush.msrb.mxu3 %v2562_v8 }
 0x259   :  { %733 = vmatpush.msrb.mxu3 %v2561_v10 }
 0x2c1   :  { %v332_v11 = vpop.f32.mrf.mxu3 }
 0x2c2   :  { %2545 = vmatmul.msk.f32.vlgmr.msra.gmra.mxu0 %vm233_vm1, %v332_v11 }
 0x2c3   :  { %v355_v13 = vpop.f32.mrf.mxu0 }
 0x2c9   :  { %v452_v37 = vpop.f32.mrf.mxu3 }
 0x2ca   :  { %2546 = vmatmul.msk.f32.gmra.mxu0 %vm233_vm1, %v355_v13  ;;  %v453_v38 = vadd.f32 %v2754_v36, %v452_v37  ;;  %v2586_v37 = vld [vmem:[%s2959_s29 + $0x70] sm:$0xff] }
 0x2cb   :  { %v481_v14 = vpop.f32.mrf.mxu0 }
 0x2cc   :  { %v510_v18 = vmul.f32 0.35355338, %v481_v14  ;;  %554 = vmatpush.msra.mxu1 %v453_v38  ;;  %v2580_v38 = vld [vmem:[%s2949_s21 + $0x78] sm:$0xff] }
 0x2ce   :  { %v512_v20 = vadd.f32 %v510_v18, %v3118_v25  ;;  %664 = vmatpush.msrb.mxu1 %v2550_v45  ;;  %v2577_v45 = vld [vmem:[%s2949_s21 + $0x60] sm:$0xff] }
 0x2d0   :  { %v514_v21 = vsel %vm233_vm1, %v512_v20, -inf  ;;  %665 = vmatpush.msrb.mxu1 %v2549_v46 }
 0x2d1   :  { %v455_v39 = vpop.f32.mrf.mxu3 }
 0x2d2   :  { %v456_v40 = vadd.f32 %v2754_v36, %v455_v39  ;;  %666 = vmatpush.msrb.mxu1 %v2548_v47  ;;  %v2587_v36 = vld [vmem:[%s2959_s29 + $0x78] sm:$0xff]  ;;  %v2585_v39 = vld [vmem:[%s2959_s29 + $0x68] sm:$0xff] }
 0x2d3   :  { %v507_v15 = vpop.f32.mrf.mxu0 }
 0x2d4   :  { %v511_v16 = vmul.f32 0.35355338, %v507_v15  ;;  %577 = vmatpush.msra.mxu2 %v456_v40  ;;  %667 = vmatpush.msrb.mxu1 %v2547_v48  ;;  %v2579_v40 = vld [vmem:[%s2949_s21 + $0x70] sm:$0xff] }
 0x2d6   :  { %v513_v17 = vadd.f32 %v511_v16, %v3118_v25  ;;  %697 = vmatpush.msrb.mxu2 %v2557_v41  ;;  %v2584_v41 = vld [vmem:[%s2959_s29 + $0x60] sm:$0xff]  ;;  %s3549_s29 = sld [smem:[#allocation11_spill]] }
 0x2d8   :  { %v517_v19 = vsel %vm233_vm1, %v513_v17, -inf  ;;  %698 = vmatpush.msrb.mxu2 %v2556_v42 }
 0x2d9   :  { %518 = vmax.xlane.f32.xlu2 %v517_v19 }
 0x2da   :  { %699 = vmatpush.msrb.mxu2 %v2555_v43  ;;  %v2578_v43 = vld [vmem:[%s2949_s21 + $0x68] sm:$0xff]  ;;  %s3547_s21 = sld [smem:[#allocation9_spill]] }
 0x2dc   :  { %700 = vmatpush.msrb.mxu2 %v2554_v44 }
 0x2e1   :  { %515 = vmax.xlane.f32.xlu2 %v514_v21 }
 0x33f   :  { %v3196_v4 = vpop.f32.mrf.mxu0 }
 0x347   :  { %v3204_v11 = vpop.f32.mrf.mxu0 }
 0x34c   :  { %v519_v26 = vpop.xlane.xlu2 %518 }
 0x34d   :  { %v521_v27 = vsub.f32 %v513_v17, %v519_v26 }
 0x34f   :  { %v524_v28 = vmul.f32 1.442695, %v521_v27 }
 0x351   :  { %2791 = vpow2.f32 %v524_v28 }
 0x354   :  { %v516_v29 = vpop.xlane.xlu2 %515 }
 0x355   :  { %v520_v30 = vsub.f32 %v512_v20, %v516_v29 }
 0x357   :  { %v2792_v31 = vpop.eup %2791  ;;  %v522_v32 = vmul.f32 1.442695, %v520_v30 }
 0x358   :  { %v529_v33 = vsel %vm233_vm1, %v2792_v31, 0.0 }
 0x359   :  { %2793 = vpow2.f32 %v522_v32  ;;  %530 = vadd.xlane.f32.xlu0 %v529_v33  ;;  %v2757_v33 = vld [vmem:[%s2974_s14 + $0x2] ss:$0 sm:$0xff] }
 0x35f   :  { %v2794_v34 = vpop.eup %2793 }
 0x360   :  { %v526_v35 = vsel %vm233_vm1, %v2794_v34, 0.0 }
 0x361   :  { %527 = vadd.xlane.f32.xlu1 %v526_v35 }
 0x3cc   :  { %v531_v49 = vpop.xlane.xlu0 %530 }
 0x3cd   :  { %2795 = vrcp.f32 %v531_v49 }
 0x3d3   :  { %v2796_v50 = vpop.eup %2795 }
 0x3d4   :  { %v535_v51 = vmul.f32 %v2796_v50, %v2792_v31  ;;  %v528_v52 = vpop.xlane.xlu1 %527 }
 0x3d5   :  { %2797 = vrcp.f32 %v528_v52  ;;  %v2574_v52 = vld [vmem:[%s2979_s19 + $0x10] sm:$0xff] }
 0x3d6   :  { %2541 = vmatmul.msk.f32.vlgmr.msra.gmra.mxu2 %vm233_vm1, %v535_v51 }
 0x3db   :  { %v2798_v53 = vpop.eup %2797 }
 0x3dc   :  { %v534_v54 = vmul.f32 %v2798_v53, %v2794_v34  ;;  %v2758_v53 = vld [vmem:[%s2964_s3 + $0x3] ss:$0 sm:$0xff]  ;;  %s3550_s3 = sld [smem:[#allocation12_spill]] }
 0x3de   :  { %2540 = vmatmul.msk.f32.vlgmr.msra.gmra.mxu1 %vm233_vm1, %v534_v54  ;;  %2559 = vmatmul.msk.f32.vlgmr.msrb.gmra.mxu2 %vm141_vm0, %v3089_v7 }
 0x3e6   :  { %2560 = vmatmul.msk.f32.gmra.mxu2 %vm141_vm0, %v3097_v9  ;;  %2552 = vmatmul.msk.f32.vlgmr.msrb.gmra.mxu1 %vm141_vm0, %v3089_v7 }
 0x3ee   :  { %2553 = vmatmul.msk.f32.gmra.mxu1 %vm141_vm0, %v3097_v9 }
 0x459   :  { %v579_v56 = vpop.f32.mrf.mxu2 }
 0x45b   :  { %v556_v57 = vpop.f32.mrf.mxu1 }
 0x45c   :  { %2543 = vmatmul.msk.f32.vlgmr.msra.gmra.mxu3 %vm233_vm1, %v556_v57 }
 0x45d   :  { %953 = vmatpush.msra.mxu3 %v2587_v36 }
 0x45f   :  { %954 = vmatpush.msra.mxu3 %v2586_v37 }
 0x461   :  { %v702_v60 = vpop.f32.mrf.mxu2  ;;  %955 = vmatpush.msra.mxu3 %v2585_v39 }
 0x462   :  { %v703_v61 = vadd.f32 %v2755_v58, %v702_v60 }
 0x463   :  { %v669_v62 = vpop.f32.mrf.mxu1  ;;  %956 = vmatpush.msra.mxu3 %v2584_v41 }
 0x464   :  { %2544 = vmatmul.msk.f32.gmra.mxu3 %vm233_vm1, %v579_v56  ;;  %v670_v63 = vadd.f32 %v2756_v59, %v669_v62  ;;  %2568 = vmatpush.xpose.msk.msrb.mxu0 %vm233_vm1, %v703_v61  ;;  %v2759_v61 = vld [vmem:[%s2954_s25 + $0x3] ss:$0 sm:$0xff]  ;;  %s3548_s25 = sld [smem:[#allocation10_spill]] }
 0x467   :  { %2569 = vmatmul.msk.f32.vlgmr.msrb.gmra.mxu0 %vm233_vm1, %v670_v63 }
 0x469   :  { %v705_v0 = vpop.f32.mrf.mxu2 }
 0x46a   :  { %v706_v1 = vadd.f32 %v2755_v58, %v705_v0 }
 0x46b   :  { %v672_v2 = vpop.f32.mrf.mxu1 }
 0x46c   :  { %v673_v3 = vadd.f32 %v2756_v59, %v672_v2  ;;  %2570 = vmatpush.xpose.msk.msra.mxu1 %vm233_vm1, %v706_v1  ;;  %2566 = vmatmul.msk.f32.vlgmr.msrb.gmra.mxu3 %vm141_vm0, %v3089_v7  ;;  %v2594_v1 = vld [vmem:[%s2969_s8 + $0x78] sm:$0xff] }
 0x46f   :  { %2571 = vmatmul.msk.f32.vlgmr.msra.gmra.mxu1 %vm233_vm1, %v673_v3 }
 0x470   :  { %888 = vmatpush.msrb.mxu1 %v2574_v52 }
 0x474   :  { %2567 = vmatmul.msk.f32.gmra.mxu3 %vm141_vm0, %v3097_v9 }
 0x47c   :  { %2589 = vmatmul.msk.f32.vlgmr.msra.gmra.mxu3 %vm141_vm0, %v3089_v7 }
 0x484   :  { %2590 = vmatmul.msk.f32.gmra.mxu3 %vm141_vm0, %v3097_v9 }
 0x4df   :  { %v607_v31 = vpop.f32.mrf.mxu3 }
 0x4e0   :  { %v637_v2 = vadd.f32 %v3196_v4, %v607_v31  ;;  %v2760_v31 = vld [vmem:[%s2974_s14 + $0x3] ss:$0 sm:$0xff]  ;;  %s3552_s14 = sld [smem:[#allocation17_spill]] }
 0x4e4   :  { %v764_v12 = vpop.f32.mrf.mxu0 }
 0x4e5   :  { %v793_v13 = vmul.f32 0.35355338, %v764_v12 }
 0x4e7   :  { %v795_v14 = vadd.f32 %v793_v13, %v3118_v25  ;;  %v3214_v32 = vpop.f32.mrf.mxu3 }
 0x4e8   :  { %v640_v6 = vadd.f32 %v3204_v11, %v3214_v32  ;;  %v2592_v11 = vld [vmem:[%s2969_s8 + $0x68] sm:$0xff] }
 0x4e9   :  { %v797_v15 = vsel %vm233_vm1, %v795_v14, -inf }
 0x4ea   :  { %798 = vmax.xlane.f32.xlu2 %v797_v15 }
 0x4ec   :  { %v790_v16 = vpop.f32.mrf.mxu1 }
 0x4ed   :  { %v794_v17 = vmul.f32 0.35355338, %v790_v16 }
 0x4ef   :  { %v796_v18 = vadd.f32 %v794_v17, %v3118_v25  ;;  %v735_v34 = vpop.f32.mrf.mxu3 }
 0x4f0   :  { %v736_v35 = vadd.f32 %v2757_v33, %v735_v34 }
 0x4f1   :  { %v800_v19 = vsel %vm233_vm1, %v796_v18, -inf }
 0x4f2   :  { %801 = vmax.xlane.f32.xlu0 %v800_v19  ;;  %837 = vmatpush.msra.mxu2 %v736_v35  ;;  %v2593_v19 = vld [vmem:[%s2969_s8 + $0x70] sm:$0xff] }
 0x4f4   :  { %920 = vmatpush.msrb.mxu2 %v2580_v38 }
 0x4f6   :  { %921 = vmatpush.msrb.mxu2 %v2579_v40 }
 0x4f7   :  { %v738_v42 = vpop.f32.mrf.mxu3 }
 0x4f8   :  { %v739_v44 = vadd.f32 %v2757_v33, %v738_v42  ;;  %922 = vmatpush.msrb.mxu2 %v2578_v43  ;;  %v2604_v42 = vld [vmem:[%s2979_s19 + $0x18] sm:$0xff]  ;;  %s3553_s19 = sld [smem:[#allocation13_spill]] }
 0x4fa   :  { %860 = vmatpush.msra.mxu0 %v739_v44  ;;  %923 = vmatpush.msrb.mxu2 %v2577_v45  ;;  %v2761_v45 = vld [vmem:[%s2984_s24] ss:$0 sm:$0xff]  ;;  %s3554_s24 = sld [smem:[#allocation14_spill]] }
 0x4fc   :  { %986 = vmatpush.msrb.mxu0 %v2594_v1 }
 0x4fe   :  { %987 = vmatpush.msrb.mxu0 %v2593_v19 }
 0x4ff   :  { %v958_v54 = vpop.f32.mrf.mxu3 }
 0x500   :  { %v959_v55 = vadd.f32 %v2758_v53, %v958_v54  ;;  %988 = vmatpush.msrb.mxu0 %v2592_v11 }
 0x502   :  { %2598 = vmatpush.xpose.msk.msra.mxu1 %vm233_vm1, %v959_v55 }
 0x507   :  { %v961_v56 = vpop.f32.mrf.mxu3 }
 0x508   :  { %v962_v57 = vadd.f32 %v2758_v53, %v961_v56  ;;  %v2917_v56 = vmov 32.0  }
 0x55d   :  { %v799_v20 = vpop.xlane.xlu2 %798 }
 0x55e   :  { %v803_v21 = vsub.f32 %v795_v14, %v799_v20  ;;  %v2591_v20 = vld [vmem:[%s2969_s8 + $0x60] sm:$0xff]  ;;  %s3551_s8 = sld [smem:[#allocation15_spill]] }
 0x55f   :  { %989 = vmatpush.msrb.mxu0 %v2591_v20  ;;  %v3296_v20 = vld [vmem:[%s2934_s9 + $0x8] sm:$0xff] }
 0x560   :  { %v805_v22 = vmul.f32 1.442695, %v803_v21 }
 0x562   :  { %2799 = vpow2.f32 %v805_v22 }
 0x565   :  { %v802_v23 = vpop.xlane.xlu0 %801 }
 0x566   :  { %v804_v24 = vsub.f32 %v796_v18, %v802_v23 }
 0x568   :  { %v2800_v26 = vpop.eup %2799  ;;  %v807_v27 = vmul.f32 1.442695, %v804_v24 }
 0x569   :  { %v809_v28 = vsel %vm233_vm1, %v2800_v26, 0.0 }
 0x56a   :  { %2801 = vpow2.f32 %v807_v27  ;;  %810 = vadd.xlane.f32.xlu1 %v809_v28 }
 0x570   :  { %v2802_v29 = vpop.eup %2801 }
 0x571   :  { %v812_v30 = vsel %vm233_vm1, %v2802_v29, 0.0 }
 0x572   :  { %813 = vadd.xlane.f32.xlu2 %v812_v30 }
 0x5dd   :  { %v811_v46 = vpop.xlane.xlu1 %810 }
 0x5de   :  { %2803 = vrcp.f32 %v811_v46 }
 0x5e4   :  { %v2804_v47 = vpop.eup %2803 }
 0x5e5   :  { %v817_v48 = vmul.f32 %v2804_v47, %v2800_v26  ;;  %v814_v49 = vpop.xlane.xlu2 %813 }
 0x5e6   :  { %2805 = vrcp.f32 %v814_v49 }
 0x5e7   :  { %2572 = vmatmul.msk.f32.vlgmr.msra.gmra.mxu2 %vm233_vm1, %v817_v48 }
 0x5e8   :  { %2600 = vmatpush.xpose.msk.msra.mxu2 %vm233_vm1, %v962_v57 }
 0x5ec   :  { %v2806_v50 = vpop.eup %2805 }
 0x5ed   :  { %v818_v51 = vmul.f32 %v2806_v50, %v2802_v29 }
 0x5ef   :  { %2573 = vmatmul.msk.f32.vlgmr.msra.gmra.mxu0 %vm233_vm1, %v818_v51  ;;  %2582 = vmatmul.msk.f32.vlgmr.msrb.gmra.mxu2 %vm141_vm0, %v3089_v7 }
 0x5f7   :  { %2583 = vmatmul.msk.f32.gmra.mxu2 %vm141_vm0, %v3097_v9  ;;  %2596 = vmatmul.msk.f32.vlgmr.msrb.gmra.mxu0 %vm141_vm0, %v3089_v7 }
 0x5ff   :  { %2597 = vmatmul.msk.f32.gmra.mxu0 %vm141_vm0, %v3097_v9 }
 0x66a   :  { %v839_v58 = vpop.f32.mrf.mxu2 }
 0x66b   :  { %2575 = vmatmul.msk.f32.vlgmr.msrb.gmra.mxu1 %vm233_vm1, %v839_v58 }
 0x66c   :  { %v862_v59 = vpop.f32.mrf.mxu0  ;;  %1144 = vmatpush.msrb.mxu1 %v2604_v42 }
 0x672   :  { %v925_v60 = vpop.f32.mrf.mxu2 }
 0x673   :  { %2576 = vmatmul.msk.f32.gmra.mxu1 %vm233_vm1, %v862_v59  ;;  %v926_v62 = vadd.f32 %v2759_v61, %v925_v60 }
 0x674   :  { %v991_v32 = vpop.f32.mrf.mxu0 }
 0x675   :  { %v992_v33 = vadd.f32 %v2760_v31, %v991_v32 }
 0x677   :  { %1093 = vmatpush.msrb.mxu3 %v992_v33  ;;  %v2762_v33 = vld [vmem:[%s2989_s30] ss:$0 sm:$0xff]  ;;  %s3555_s30 = sld [smem:[#allocation16_spill]] }
 0x67a   :  { %v928_v63 = vpop.f32.mrf.mxu2 }
 0x67b   :  { %v929_v0 = vadd.f32 %v2759_v61, %v928_v63  ;;  %2599 = vmatmul.msk.f32.vlgmr.msra.gmra.mxu1 %vm233_vm1, %v926_v62 }
 0x67c   :  { %v994_v34 = vpop.f32.mrf.mxu0 }
 0x67d   :  { %2601 = vmatmul.msk.f32.vlgmr.msra.gmra.mxu2 %vm233_vm1, %v929_v0  ;;  %v995_v35 = vadd.f32 %v2760_v31, %v994_v34 }
 0x67f   :  { %1116 = vmatpush.msra.mxu0 %v995_v35 }
 0x6e8   :  { %v890_v3 = vpop.f32.mrf.mxu1 }
 0x6e9   :  { %v896_v5 = vadd.f32 %v890_v3, %v637_v2 }
 0x6f0   :  { %v893_v8 = vpop.f32.mrf.mxu1 }
 0x6f1   :  { %v3248_v10 = vadd.f32 %v893_v8, %v640_v6 }
 0x6f8   :  { %v1020_v12 = vpop.f32.mrf.mxu1 }
 0x6f9   :  { %v1049_v13 = vmul.f32 0.35355338, %v1020_v12  ;;  %v1264_v12 = vld [vmem:[%s3009_s27 + $0x10] sm:$0xff] }
 0x6fb   :  { %v1051_v14 = vadd.f32 %v1049_v13, %v3118_v25  ;;  %v1228_v13 = vld [vmem:[%s2999_s12 + $0x18] sm:$0xff] }
 0x6fc   :  { %1251 = vmatpush.msrb.mxu2 %v1228_v13  ;;  %v2629_v13 = vld [vmem:[%s3009_s27 + $0x38] sm:$0xff] }
 0x6fd   :  { %v1053_v15 = vsel %vm233_vm1, %v1051_v14, -inf }
 0x6fe   :  { %1054 = vmax.xlane.f32.xlu0 %v1053_v15  ;;  %v1227_v15 = vld [vmem:[%s2999_s12 + $0x10] sm:$0xff] }
 0x6ff   :  { %1252 = vmatpush.msrb.mxu2 %v1227_v15  ;;  %v2627_v15 = vld [vmem:[%s3009_s27 + $0x28] sm:$0xff] }
 0x700   :  { %v1046_v4 = vpop.f32.mrf.mxu2 }
 0x701   :  { %v1050_v16 = vmul.f32 0.35355338, %v1046_v4  ;;  %v1262_v4 = vld [vmem:[%s3009_s27] sm:$0xff] }
 0x703   :  { %v1052_v17 = vadd.f32 %v1050_v16, %v3118_v25  ;;  %v1226_v16 = vld [vmem:[%s2999_s12 + $0x8] sm:$0xff] }
 0x704   :  { %1253 = vmatpush.msrb.mxu2 %v1226_v16 }
 0x705   :  { %v1056_v18 = vsel %vm233_vm1, %v1052_v17, -inf }
 0x706   :  { %1057 = vmax.xlane.f32.xlu1 %v1056_v18  ;;  %v1225_v18 = vld [vmem:[%s2999_s12] sm:$0xff] }
 0x707   :  { %1254 = vmatpush.msrb.mxu2 %v1225_v18 }
 0x771   :  { %v1055_v21 = vpop.xlane.xlu0 %1054 }
 0x772   :  { %v1059_v22 = vsub.f32 %v1051_v14, %v1055_v21  ;;  %v1263_v14 = vld [vmem:[%s3009_s27 + $0x8] sm:$0xff] }
 0x774   :  { %v1061_v23 = vmul.f32 1.442695, %v1059_v22 }
 0x776   :  { %2807 = vpow2.f32 %v1061_v23 }
 0x779   :  { %v1058_v25 = vpop.xlane.xlu1 %1057 }
 0x77a   :  { %v1060_v24 = vsub.f32 %v1052_v17, %v1058_v25  ;;  %v3289_v17 = vld [vmem:[%s2934_s9] sm:$0xff]  ;;  %s3545_s9 = sld [smem:[#allocation7_spill]] }
 0x77c   :  { %v2808_v26 = vpop.eup %2807  ;;  %v1063_v27 = vmul.f32 1.442695, %v1060_v24 }
 0x77d   :  { %v1065_v28 = vsel %vm233_vm1, %v2808_v26, 0.0 }
 0x77e   :  { %2809 = vpow2.f32 %v1063_v27  ;;  %1066 = vadd.xlane.f32.xlu2 %v1065_v28 }
 0x784   :  { %v2810_v29 = vpop.eup %2809 }
 0x785   :  { %v1068_v30 = vsel %vm233_vm1, %v2810_v29, 0.0 }
 0x786   :  { %1069 = vadd.xlane.f32.xlu0 %v1068_v30 }
 0x7f1   :  { %v1067_v36 = vpop.xlane.xlu2 %1066 }
 0x7f2   :  { %2811 = vrcp.f32 %v1067_v36 }
 0x7f8   :  { %v2812_v37 = vpop.eup %2811 }
 0x7f9   :  { %v1073_v38 = vmul.f32 %v2812_v37, %v2808_v26  ;;  %v1070_v39 = vpop.xlane.xlu0 %1069  ;;  %v2763_v37 = vld [vmem:[%s3543_s0] ss:$0 sm:$0xff] }
 0x7fa   :  { %2813 = vrcp.f32 %v1070_v39 }
 0x7fb   :  { %2602 = vmatmul.msk.f32.vlgmr.msrb.gmra.mxu3 %vm233_vm1, %v1073_v38  ;;  %2815 = vrcp.f32 %v2917_v56  ;;  %v2765_v56 = vld [vmem:[%s3545_s9] ss:$0 sm:$0xff] }
 0x800   :  { %v2814_v40 = vpop.eup %2813 }
 0x801   :  { %v1074_v41 = vmul.f32 %v2814_v40, %v2810_v29  ;;  %v2816_v57 = vpop.eup %2815 }
 0x802   :  { %v1171_v58 = vmul.f32 32.0, %v2816_v57  ;;  %vm1175_vm2 = vweird.f32 %v2816_v57 }
 0x803   :  { %2603 = vmatmul.msk.f32.vlgmr.msra.gmra.mxu0 %vm233_vm1, %v1074_v41 }
 0x804   :  { %v1172_v59 = vsub.f32 1.0, %v1171_v58 }
 0x806   :  { %v1173_v60 = vmul.f32 %v2816_v57, %v1172_v59 }
 0x87e   :  { %v1095_v43 = vpop.f32.mrf.mxu3 }
 0x87f   :  { %2605 = vmatmul.msk.f32.vlgmr.msrb.gmra.mxu1 %vm233_vm1, %v1095_v43 }
 0x880   :  { %v1118_v44 = vpop.f32.mrf.mxu0 }
 0x887   :  { %2606 = vmatmul.msk.f32.gmra.mxu1 %vm233_vm1, %v1118_v44 }
 0x8fc   :  { %v1146_v46 = vpop.f32.mrf.mxu1 }
 0x8fd   :  { %v1152_v47 = vadd.f32 %v1146_v46, %v896_v5 }
 0x8ff   :  { %v1158_v48 = vadd.f32 %v2761_v45, %v1152_v47  ;;  %v2764_v47 = vld [vmem:[%s3544_s5] ss:$0 sm:$0xff] }
 0x901   :  { %v1160_v49 = vadd.f32 %v1158_v48, %v3089_v7  ;;  %v1174_v7 = vadd.f32 %v2816_v57, %v1173_v60 }
 0x903   :  { %v1164_v50 = vsel %vm141_vm0, %v1160_v49, 0.0  ;;  %v3275_v61 = vsel %vm1175_vm2, %v2816_v57, %v1174_v7 }
 0x904   :  { %1165 = vadd.xlane.f32.xlu1 %v1164_v50  ;;  %v1149_v51 = vpop.f32.mrf.mxu1  ;;  %v2622_v50 = vld [vmem:[%s2999_s12 + $0x38] sm:$0xff] }
 0x905   :  { %v1153_v52 = vadd.f32 %v1149_v51, %v3248_v10  ;;  %v1265_v10 = vld [vmem:[%s3009_s27 + $0x18] sm:$0xff]  ;;  %v2621_v51 = vld [vmem:[%s2999_s12 + $0x30] sm:$0xff] }
 0x906   :  { %1288 = vmatpush.msra.mxu3 %v1265_v10  ;;  %v1300_v10 = vld [vmem:[%s3547_s21 + $0x8] sm:$0xff] }
 0x907   :  { %v1159_v53 = vadd.f32 %v2761_v45, %v1153_v52 }
 0x908   :  { %1289 = vmatpush.msra.mxu3 %v1264_v12  ;;  %v1299_v12 = vld [vmem:[%s3547_s21] sm:$0xff] }
 0x909   :  { %v1161_v54 = vadd.f32 %v1159_v53, %v3097_v9 }
 0x90a   :  { %1290 = vmatpush.msra.mxu3 %v1263_v14  ;;  %v2628_v14 = vld [vmem:[%s3009_s27 + $0x30] sm:$0xff] }
 0x90b   :  { %v1167_v55 = vsel %vm141_vm0, %v1161_v54, 0.0 }
 0x90c   :  { %1168 = vadd.xlane.f32.xlu2 %v1167_v55  ;;  %1291 = vmatpush.msra.mxu3 %v1262_v4  ;;  %v2619_v55 = vld [vmem:[%s2999_s12 + $0x20] sm:$0xff] }
 0x90d   :  { %2609 = vmatmul.msk.f32.vlgmr.msra.gmra.mxu3 %vm141_vm0, %v3289_v17  ;;  %v2626_v4 = vld [vmem:[%s3009_s27 + $0x20] sm:$0xff] }
 0x915   :  { %2610 = vmatmul.msk.f32.gmra.mxu3 %vm141_vm0, %v3296_v20 }
 0x977   :  { %v1166_v62 = vpop.xlane.xlu1 %1165 }
 0x978   :  { %v1177_v63 = vmul.f32 %v3275_v61, %v1166_v62  ;;  %v3326_v62 = vld [vmem:[%s3546_s13] sm:$0xff] }
 0x97a   :  { %v1179_v9 = vsub.f32 %v1160_v49, %v1177_v63 }
 0x97c   :  { %v1181_v0 = vmul.f32 %v1179_v9, %v1179_v9 }
 0x97e   :  { %v1183_v1 = vsel %vm141_vm0, %v1181_v0, 0.0 }
 0x97f   :  { %1184 = vadd.xlane.f32.xlu0 %v1183_v1  ;;  %v1169_v2 = vpop.xlane.xlu2 %1168 }
 0x980   :  { %v1178_v3 = vmul.f32 %v3275_v61, %v1169_v2 }
 0x982   :  { %v1180_v5 = vsub.f32 %v1161_v54, %v1178_v3  ;;  %v2620_v54 = vld [vmem:[%s2999_s12 + $0x28] sm:$0xff] }
 0x984   :  { %v1182_v6 = vmul.f32 %v1180_v5, %v1180_v5 }
 0x986   :  { %v1186_v8 = vsel %vm141_vm0, %v1182_v6, 0.0  ;;  %v1302_v6 = vld [vmem:[%s3547_s21 + $0x18] sm:$0xff] }
 0x987   :  { %1187 = vadd.xlane.f32.xlu1 %v1186_v8  ;;  %1319 = vmatpush.msrb.mxu0 %v1302_v6  ;;  %v1301_v8 = vld [vmem:[%s3547_s21 + $0x10] sm:$0xff] }
 0x989   :  { %1320 = vmatpush.msrb.mxu0 %v1301_v8 }
 0x98b   :  { %1321 = vmatpush.msrb.mxu0 %v1300_v10 }
 0x98d   :  { %1322 = vmatpush.msrb.mxu0 %v1299_v12 }
 0x98e   :  { %2611 = vmatmul.msk.f32.vlgmr.msrb.gmra.mxu0 %vm141_vm0, %v3289_v17 }
 0x990   :  { %v1293_v48 = vpop.f32.mrf.mxu3 }
 0x991   :  { %v1294_v49 = vadd.f32 %v2764_v47, %v1293_v48 }
 0x993   :  { %2613 = vmatpush.xpose.msk.msra.mxu1 %vm233_vm1, %v1294_v49 }
 0x996   :  { %2612 = vmatmul.msk.f32.gmra.mxu0 %vm141_vm0, %v3296_v20 }
 0x997   :  { %1477 = vmatpush.msrb.mxu1 %v2622_v50  ;;  %v1454_v50 = vld [vmem:[%s3549_s29] sm:$0xff] }
 0x998   :  { %v1296_v52 = vpop.f32.mrf.mxu3 }
 0x999   :  { %v1297_v53 = vadd.f32 %v2764_v47, %v1296_v52  ;;  %1478 = vmatpush.msrb.mxu1 %v2621_v51 }
 0x99b   :  { %2615 = vmatpush.xpose.msk.msra.mxu2 %vm233_vm1, %v1297_v53  ;;  %1479 = vmatpush.msrb.mxu1 %v2620_v54 }
 0x99d   :  { %1480 = vmatpush.msrb.mxu1 %v2619_v55 }
 0x9f2   :  { %v1185_v19 = vpop.xlane.xlu0 %1184 }
 0x9f3   :  { %v1189_v11 = vmul.f32 %v1185_v19, %v3275_v61 }
 0x9f5   :  { %v1191_v21 = vadd.f32 1e-05, %v1189_v11 }
 0x9f7   :  { %2817 = vrsqrt.f32 %v1191_v21  ;;  %vm1199_vm4 = vweird.f32 %v1191_v21 }
 0x9fa   :  { %v1188_v22 = vpop.xlane.xlu1 %1187 }
 0x9fb   :  { %v1190_v23 = vmul.f32 %v1188_v22, %v3275_v61 }
 0x9fd   :  { %v2818_v25 = vpop.eup %2817  ;;  %v1192_v24 = vadd.f32 1e-05, %v1190_v23 }
 0x9fe   :  { %v1194_v26 = vmul.f32 %v2818_v25, %v1191_v21  ;;  %vm1200_vm3 = vweird.f32 %v2818_v25 }
 0x9ff   :  { %2819 = vrsqrt.f32 %v1192_v24  ;;  %vm1201_vm5 = vmor %vm1199_vm4, %vm1200_vm3  ;;  %vm1209_vm7 = vweird.f32 %v1192_v24 }
 0xa00   :  { %v1195_v27 = vmul.f32 %v2818_v25, %v1194_v26 }
 0xa02   :  { %v1196_v28 = vmul.f32 0.5, %v1195_v27  ;;  %v2767_v27 = vld [vmem:[%s3548_s25] ss:$0 sm:$0xff] }
 0xa04   :  { %v1197_v29 = vsub.f32 1.5, %v1196_v28 }
 0xa05   :  { %v2820_v30 = vpop.eup %2819 }
 0xa06   :  { %v1198_v31 = vmul.f32 %v2818_v25, %v1197_v29  ;;  %v1204_v32 = vmul.f32 %v2820_v30, %v1192_v24  ;;  %vm1210_vm6 = vweird.f32 %v2820_v30 }
 0xa07   :  { %vm1211_vm8 = vmor %vm1209_vm7, %vm1210_vm6 }
 0xa08   :  { %v1202_v34 = vsel %vm1201_vm5, %v2818_v25, %v1198_v31  ;;  %v1205_v35 = vmul.f32 %v2820_v30, %v1204_v32  ;;  %v2768_v32 = vld [vmem:[%s3544_s5 + $0x1] ss:$0 sm:$0xff] }
 0xa09   :  { %v1213_v36 = vmul.f32 %v1202_v34, %v1179_v9 }
 0xa0a   :  { %v1206_v38 = vmul.f32 0.5, %v1205_v35 }
 0xa0b   :  { %v1218_v39 = vmul.f32 %v2762_v33, %v1213_v36  ;;  %v1324_v28 = vpop.f32.mrf.mxu0 }
 0xa0c   :  { %v1207_v40 = vsub.f32 1.5, %v1206_v38  ;;  %v1325_v29 = vadd.f32 %v2767_v27, %v1324_v28 }
 0xa0d   :  { %v3303_v41 = vadd.f32 %v2763_v37, %v1218_v39 }
 0xa0e   :  { %v1208_v42 = vmul.f32 %v2820_v30, %v1207_v40  ;;  %1426 = vmatpush.msrb.mxu3 %v1325_v29 }
 0xa0f   :  { %2607 = vmatmul.msk.f32.vlgmr.msrb.gmra.mxu2 %vm141_vm0, %v3303_v41 }
 0xa10   :  { %v1212_v43 = vsel %vm1211_vm8, %v2820_v30, %v1208_v42  ;;  %1510 = vmatpush.msrb.mxu2 %v2629_v13 }
 0xa11   :  { %v1214_v44 = vmul.f32 %v1212_v43, %v1180_v5 }
 0xa12   :  { %1511 = vmatpush.msrb.mxu2 %v2628_v14 }
 0xa13   :  { %v1219_v45 = vmul.f32 %v2762_v33, %v1214_v44  ;;  %v1327_v30 = vpop.f32.mrf.mxu0 }
 0xa14   :  { %1512 = vmatpush.msrb.mxu2 %v2627_v15  ;;  %v1328_v31 = vadd.f32 %v2767_v27, %v1327_v30  ;;  %v2769_v15 = vld [vmem:[%s3548_s25 + $0x1] ss:$0 sm:$0xff] }
 0xa15   :  { %v3307_v46 = vadd.f32 %v2763_v37, %v1219_v45  ;;  %v2766_v45 = vld [vmem:[%s3545_s9 + $0x1] ss:$0 sm:$0xff] }
 0xa16   :  { %1513 = vmatpush.msrb.mxu2 %v2626_v4  ;;  %1449 = vmatpush.msra.mxu0 %v1328_v31  ;;  %v2658_v27 = vld [vmem:[%s3009_s27 + $0x40] sm:$0xff] }
 0xa17   :  { %2608 = vmatmul.msk.f32.gmra.mxu2 %vm141_vm0, %v3307_v46 }
 0xa92   :  { %v1256_v57 = vpop.f32.mrf.mxu2 }
 0xa93   :  { %v1257_v58 = vadd.f32 %v2765_v56, %v1256_v57 }
 0xa95   :  { %2614 = vmatmul.msk.f32.vlgmr.msra.gmra.mxu1 %vm233_vm1, %v1257_v58 }
 0xa9a   :  { %v1259_v59 = vpop.f32.mrf.mxu2 }
 0xa9b   :  { %v1260_v60 = vadd.f32 %v2765_v56, %v1259_v59 }
 0xa9d   :  { %2616 = vmatmul.msk.f32.vlgmr.msra.gmra.mxu2 %vm233_vm1, %v1260_v60  ;;  %2624 = vmatmul.msk.f32.vlgmr.msrb.gmra.mxu1 %vm141_vm0, %v3303_v41 }
 0xaa5   :  { %2625 = vmatmul.msk.f32.gmra.mxu1 %vm141_vm0, %v3307_v46  ;;  %2631 = vmatmul.msk.f32.vlgmr.msrb.gmra.mxu2 %vm141_vm0, %v3289_v17 }
 0xaad   :  { %2632 = vmatmul.msk.f32.gmra.mxu2 %vm141_vm0, %v3296_v20 }
 0xb12   :  { %v1353_v7 = vpop.f32.mrf.mxu1 }
 0xb13   :  { %v1382_v63 = vmul.f32 0.35355338, %v1353_v7  ;;  %v2636_v7 = vld [vmem:[%s3547_s21 + $0x38] sm:$0xff] }
 0xb14   :  { %1543 = vmatpush.msra.mxu3 %v2636_v7 }
 0xb15   :  { %v1384_v9 = vadd.f32 %v1382_v63, %v3326_v62  ;;  %v2635_v63 = vld [vmem:[%s3547_s21 + $0x30] sm:$0xff] }
 0xb16   :  { %1544 = vmatpush.msra.mxu3 %v2635_v63 }
 0xb17   :  { %v1386_v0 = vsel %vm233_vm1, %v1384_v9, -inf }
 0xb18   :  { %1387 = vmax.xlane.f32.xlu1 %v1386_v0  ;;  %v2633_v0 = vld [vmem:[%s3547_s21 + $0x20] sm:$0xff] }
 0xb1a   :  { %v1482_v44 = vpop.f32.mrf.mxu1 }
 0xb1b   :  { %v1483_v47 = vadd.f32 %v2766_v45, %v1482_v44 }
 0xb20   :  { %v1379_v1 = vpop.f32.mrf.mxu2 }
 0xb21   :  { %v1383_v2 = vmul.f32 0.35355338, %v1379_v1 }
 0xb22   :  { %v1485_v48 = vpop.f32.mrf.mxu1 }
 0xb23   :  { %v1385_v3 = vadd.f32 %v1383_v2, %v3326_v62  ;;  %v1486_v49 = vadd.f32 %v2766_v45, %v1485_v48 }
 0xb25   :  { %v1389_v5 = vsel %vm233_vm1, %v1385_v3, -inf }
 0xb26   :  { %1390 = vmax.xlane.f32.xlu2 %v1389_v5 }
 0xb28   :  { %v1515_v33 = vpop.f32.mrf.mxu2 }
 0xb29   :  { %v1516_v34 = vadd.f32 %v2768_v32, %v1515_v33 }
 0xb2b   :  { %2640 = vmatpush.xpose.msk.msrb.mxu0 %vm233_vm1, %v1516_v34  ;;  %v2646_v34 = vld [vmem:[%s3549_s29 + $0x8] sm:$0xff] }
 0xb30   :  { %v1518_v39 = vpop.f32.mrf.mxu2 }
 0xb31   :  { %v1519_v42 = vadd.f32 %v2768_v32, %v1518_v39  ;;  %v2770_v39 = vld [vmem:[%s3545_s9 + $0x2] ss:$0 sm:$0xff] }
 0xb8b   :  { %v1388_v16 = vpop.xlane.xlu1 %1387 }
 0xb8c   :  { %v1392_v18 = vsub.f32 %v1384_v9, %v1388_v16  ;;  %v2634_v9 = vld [vmem:[%s3547_s21 + $0x28] sm:$0xff] }
 0xb8d   :  { %1545 = vmatpush.msra.mxu3 %v2634_v9 }
 0xb8e   :  { %v1394_v19 = vmul.f32 1.442695, %v1392_v18  ;;  %v2654_v18 = vld [vmem:[%s2999_s12 + $0x58] sm:$0xff] }
 0xb8f   :  { %1546 = vmatpush.msra.mxu3 %v2633_v0 }
 0xb90   :  { %2821 = vpow2.f32 %v1394_v19  ;;  %v2653_v19 = vld [vmem:[%s2999_s12 + $0x50] sm:$0xff] }
 0xb96   :  { %v2822_v11 = vpop.eup %2821 }
 0xb97   :  { %v1398_v21 = vsel %vm233_vm1, %v2822_v11, 0.0 }
 0xb98   :  { %1399 = vadd.xlane.f32.xlu2 %v1398_v21  ;;  %v2652_v21 = vld [vmem:[%s2999_s12 + $0x48] sm:$0xff] }
 0xb99   :  { %v1391_v22 = vpop.xlane.xlu2 %1390 }
 0xb9a   :  { %v1393_v23 = vsub.f32 %v1385_v3, %v1391_v22 }
 0xb9c   :  { %v1396_v25 = vmul.f32 1.442695, %v1393_v23  ;;  %v2651_v23 = vld [vmem:[%s2999_s12 + $0x40] sm:$0xff] }
 0xb9e   :  { %2823 = vpow2.f32 %v1396_v25  ;;  %v2661_v25 = vld [vmem:[%s3009_s27 + $0x58] sm:$0xff] }
 0xba4   :  { %v2824_v24 = vpop.eup %2823 }
 0xba5   :  { %v1401_v26 = vsel %vm233_vm1, %v2824_v24, 0.0 }
 0xba6   :  { %1402 = vadd.xlane.f32.xlu0 %v1401_v26  ;;  %v2659_v26 = vld [vmem:[%s3009_s27 + $0x48] sm:$0xff] }
 0xc0b   :  { %v1400_v35 = vpop.xlane.xlu2 %1399 }
 0xc0c   :  { %2825 = vrcp.f32 %v1400_v35 }
 0xc12   :  { %v2826_v36 = vpop.eup %2825 }
 0xc13   :  { %v1406_v37 = vmul.f32 %v2826_v36, %v2822_v11 }
 0xc15   :  { %2617 = vmatmul.msk.f32.vlgmr.msrb.gmra.mxu3 %vm233_vm1, %v1406_v37  ;;  %v2771_v37 = vld [vmem:[%s3544_s5 + $0x2] ss:$0 sm:$0xff] }
 0xc16   :  { %1701 = vmatpush.msrb.mxu3 %v2646_v34  ;;  %v2678_v34 = vld [vmem:[%s3549_s29 + $0x10] sm:$0xff] }
 0xc19   :  { %v1403_v38 = vpop.xlane.xlu0 %1402 }
 0xc1a   :  { %2827 = vrcp.f32 %v1403_v38 }
 0xc1d   :  { %2638 = vmatmul.msk.f32.vlgmr.msra.gmra.mxu3 %vm141_vm0, %v3289_v17 }
 0xc20   :  { %v2828_v40 = vpop.eup %2827 }
 0xc21   :  { %v1407_v43 = vmul.f32 %v2828_v40, %v2824_v24  ;;  %v2660_v24 = vld [vmem:[%s3009_s27 + $0x50] sm:$0xff] }
 0xc23   :  { %2618 = vmatmul.msk.f32.vlgmr.msra.gmra.mxu0 %vm233_vm1, %v1407_v43 }
 0xc24   :  { %2642 = vmatpush.xpose.msk.msra.mxu0 %vm233_vm1, %v1519_v42 }
 0xc25   :  { %2639 = vmatmul.msk.f32.gmra.mxu3 %vm141_vm0, %v3296_v20 }
 0xc2b   :  { %2641 = vmatmul.msk.f32.vlgmr.msrb.gmra.mxu0 %vm233_vm1, %v1483_v47 }
 0xc2c   :  { %1730 = vmatpush.msrb.mxu0 %v1454_v50  ;;  %v2668_v50 = vld [vmem:[%s3547_s21 + $0x58] sm:$0xff] }
 0xc2d   :  { %1826 = vmatpush.msra.mxu3 %v2668_v50  ;;  %v2698_v50 = vld [vmem:[%s3547_s21 + $0x78] sm:$0xff] }
 0xc33   :  { %2643 = vmatmul.msk.f32.vlgmr.msra.gmra.mxu0 %vm233_vm1, %v1486_v49 }
 0xc98   :  { %v1428_v51 = vpop.f32.mrf.mxu3 }
 0xc99   :  { %2649 = vmatmul.msk.f32.vlgmr.msrb.gmra.mxu0 %vm233_vm1, %v1428_v51  ;;  %v2667_v51 = vld [vmem:[%s3547_s21 + $0x50] sm:$0xff] }
 0xc9a   :  { %1827 = vmatpush.msra.mxu3 %v2667_v51 }
 0xca0   :  { %v1451_v52 = vpop.f32.mrf.mxu0  ;;  %v1548_v4 = vpop.f32.mrf.mxu3 }
 0xca1   :  { %2650 = vmatmul.msk.f32.gmra.mxu0 %vm233_vm1, %v1451_v52  ;;  %v1549_v16 = vadd.f32 %v2769_v15, %v1548_v4  ;;  %v2666_v52 = vld [vmem:[%s3547_s21 + $0x48] sm:$0xff] }
 0xca2   :  { %1828 = vmatpush.msra.mxu3 %v2666_v52 }
 0xca3   :  { %1650 = vmatpush.msra.mxu1 %v1549_v16 }
 0xca5   :  { %1760 = vmatpush.msrb.mxu1 %v2654_v18  ;;  %v2691_v18 = vld [vmem:[%s3009_s27 + $0x78] sm:$0xff] }
 0xca7   :  { %1761 = vmatpush.msrb.mxu1 %v2653_v19  ;;  %v2690_v19 = vld [vmem:[%s3009_s27 + $0x70] sm:$0xff] }
 0xca8   :  { %v1577_v53 = vpop.f32.mrf.mxu0  ;;  %v1551_v11 = vpop.f32.mrf.mxu3 }
 0xca9   :  { %v1606_v54 = vmul.f32 0.35355338, %v1577_v53  ;;  %v1552_v22 = vadd.f32 %v2769_v15, %v1551_v11  ;;  %1762 = vmatpush.msrb.mxu1 %v2652_v21  ;;  %v2665_v53 = vld [vmem:[%s3547_s21 + $0x40] sm:$0xff]  ;;  %v2684_v11 = vld [vmem:[%s2999_s12 + $0x78] sm:$0xff]  ;;  %v2689_v21 = vld [vmem:[%s3009_s27 + $0x68] sm:$0xff] }
 0xcaa   :  { %1829 = vmatpush.msra.mxu3 %v2665_v53  ;;  %v2772_v15 = vld [vmem:[%s3548_s25 + $0x2] ss:$0 sm:$0xff] }
 0xcab   :  { %v1608_v55 = vadd.f32 %v1606_v54, %v3326_v62  ;;  %1673 = vmatpush.msra.mxu2 %v1552_v22  ;;  %1763 = vmatpush.msrb.mxu1 %v2651_v23  ;;  %v2683_v22 = vld [vmem:[%s2999_s12 + $0x70] sm:$0xff]  ;;  %v2688_v23 = vld [vmem:[%s3009_s27 + $0x60] sm:$0xff] }
 0xcad   :  { %v1610_v56 = vsel %vm233_vm1, %v1608_v55, -inf  ;;  %1793 = vmatpush.msrb.mxu2 %v2661_v25 }
 0xcae   :  { %1611 = vmax.xlane.f32.xlu1 %v1610_v56 }
 0xcaf   :  { %1794 = vmatpush.msrb.mxu2 %v2660_v24  ;;  %v2682_v24 = vld [vmem:[%s2999_s12 + $0x68] sm:$0xff] }
 0xcb0   :  { %v1603_v57 = vpop.f32.mrf.mxu0 }
 0xcb1   :  { %v1607_v58 = vmul.f32 0.35355338, %v1603_v57  ;;  %1795 = vmatpush.msrb.mxu2 %v2659_v26 }
 0xcb3   :  { %v1609_v59 = vadd.f32 %v1607_v58, %v3326_v62  ;;  %1796 = vmatpush.msrb.mxu2 %v2658_v27  ;;  %v2681_v27 = vld [vmem:[%s2999_s12 + $0x60] sm:$0xff] }
 0xcb5   :  { %v1613_v60 = vsel %vm233_vm1, %v1609_v59, -inf }
 0xcb6   :  { %1614 = vmax.xlane.f32.xlu0 %v1613_v60 }
 0xd16   :  { %v3404_v49 = vpop.f32.mrf.mxu0 }
 0xd1e   :  { %v3412_v54 = vpop.f32.mrf.mxu0 }
 0xd21   :  { %v1612_v1 = vpop.xlane.xlu1 %1611 }
 0xd22   :  { %v1616_v2 = vsub.f32 %v1608_v55, %v1612_v1 }
 0xd24   :  { %v1618_v3 = vmul.f32 1.442695, %v1616_v2 }
 0xd26   :  { %2829 = vpow2.f32 %v1618_v3 }
 0xd29   :  { %v1615_v5 = vpop.xlane.xlu0 %1614 }
 0xd2a   :  { %v1617_v6 = vsub.f32 %v1609_v59, %v1615_v5 }
 0xd2c   :  { %v2830_v8 = vpop.eup %2829  ;;  %v1620_v10 = vmul.f32 1.442695, %v1617_v6 }
 0xd2d   :  { %v1622_v12 = vsel %vm233_vm1, %v2830_v8, 0.0 }
 0xd2e   :  { %2831 = vpow2.f32 %v1620_v10  ;;  %1623 = vadd.xlane.f32.xlu0 %v1622_v12 }
 0xd34   :  { %v2832_v13 = vpop.eup %2831 }
 0xd35   :  { %v1625_v14 = vsel %vm233_vm1, %v2832_v13, 0.0 }
 0xd36   :  { %1626 = vadd.xlane.f32.xlu2 %v1625_v14 }
 0xda1   :  { %v1624_v28 = vpop.xlane.xlu0 %1623 }
 0xda2   :  { %2833 = vrcp.f32 %v1624_v28 }
 0xda8   :  { %v2834_v29 = vpop.eup %2833 }
 0xda9   :  { %v1630_v30 = vmul.f32 %v2834_v29, %v2830_v8  ;;  %v1627_v31 = vpop.xlane.xlu2 %1626 }
 0xdaa   :  { %2835 = vrcp.f32 %v1627_v31 }
 0xdab   :  { %2644 = vmatmul.msk.f32.vlgmr.msra.gmra.mxu1 %vm233_vm1, %v1630_v30 }
 0xdb0   :  { %v2836_v32 = vpop.eup %2835 }
 0xdb1   :  { %v1631_v33 = vmul.f32 %v2836_v32, %v2832_v13 }
 0xdb3   :  { %2645 = vmatmul.msk.f32.vlgmr.msra.gmra.mxu2 %vm233_vm1, %v1631_v33  ;;  %2656 = vmatmul.msk.f32.vlgmr.msrb.gmra.mxu1 %vm141_vm0, %v3303_v41 }
 0xdbb   :  { %2657 = vmatmul.msk.f32.gmra.mxu1 %vm141_vm0, %v3307_v46  ;;  %2663 = vmatmul.msk.f32.vlgmr.msrb.gmra.mxu2 %vm141_vm0, %v3289_v17 }
 0xdc3   :  { %2664 = vmatmul.msk.f32.gmra.mxu2 %vm141_vm0, %v3296_v20 }
 0xe28   :  { %v1652_v35 = vpop.f32.mrf.mxu1 }
 0xe29   :  { %2647 = vmatmul.msk.f32.vlgmr.msrb.gmra.mxu3 %vm233_vm1, %v1652_v35  ;;  %v2773_v35 = vld [vmem:[%s3544_s5 + $0x3] ss:$0 sm:$0xff] }
 0xe2a   :  { %2049 = vmatpush.msrb.mxu3 %v2691_v18 }
 0xe2c   :  { %2050 = vmatpush.msrb.mxu3 %v2690_v19 }
 0xe2e   :  { %2051 = vmatpush.msrb.mxu3 %v2689_v21 }
 0xe30   :  { %v1765_v38 = vpop.f32.mrf.mxu1  ;;  %2052 = vmatpush.msrb.mxu3 %v2688_v23 }
 0xe31   :  { %v1766_v43 = vadd.f32 %v2770_v39, %v1765_v38 }
 0xe36   :  { %v1675_v36 = vpop.f32.mrf.mxu2 }
 0xe37   :  { %2648 = vmatmul.msk.f32.gmra.mxu3 %vm233_vm1, %v1675_v36 }
 0xe38   :  { %v1768_v45 = vpop.f32.mrf.mxu1 }
 0xe39   :  { %v1769_v48 = vadd.f32 %v2770_v39, %v1768_v45 }
 0xe3e   :  { %v1798_v40 = vpop.f32.mrf.mxu2 }
 0xe3f   :  { %v1799_v42 = vadd.f32 %v2771_v37, %v1798_v40  ;;  %2670 = vmatmul.msk.f32.vlgmr.msra.gmra.mxu3 %vm141_vm0, %v3289_v17 }
 0xe41   :  { %2672 = vmatpush.xpose.msk.msra.mxu0 %vm233_vm1, %v1799_v42 }
 0xe44   :  { %2673 = vmatmul.msk.f32.vlgmr.msra.gmra.mxu0 %vm233_vm1, %v1766_v43 }
 0xe46   :  { %v1801_v44 = vpop.f32.mrf.mxu2 }
 0xe47   :  { %v1802_v47 = vadd.f32 %v2771_v37, %v1801_v44  ;;  %2671 = vmatmul.msk.f32.gmra.mxu3 %vm141_vm0, %v3296_v20  ;;  %v2774_v44 = vld [vmem:[%s3545_s9 + $0x3] ss:$0 sm:$0xff] }
 0xe49   :  { %2674 = vmatpush.xpose.msk.msra.mxu1 %vm233_vm1, %v1802_v47 }
 0xe4c   :  { %2675 = vmatmul.msk.f32.vlgmr.msra.gmra.mxu1 %vm233_vm1, %v1769_v48 }
 0xe4d   :  { %1984 = vmatpush.msrb.mxu1 %v2678_v34 }
 0xe4f   :  { %2693 = vmatmul.msk.f32.vlgmr.msrb.gmra.mxu3 %vm141_vm0, %v3289_v17 }
 0xe57   :  { %2694 = vmatmul.msk.f32.gmra.mxu3 %vm141_vm0, %v3296_v20 }
 0xeac   :  { %v1703_v13 = vpop.f32.mrf.mxu3 }
 0xead   :  { %v1733_v51 = vadd.f32 %v3404_v49, %v1703_v13 }
 0xeba   :  { %v3422_v14 = vpop.f32.mrf.mxu3 }
 0xec1   :  { %v1860_v55 = vpop.f32.mrf.mxu0 }
 0xec2   :  { %v1889_v56 = vmul.f32 0.35355338, %v1860_v55  ;;  %v1831_v4 = vpop.f32.mrf.mxu3  ;;  %v1736_v55 = vadd.f32 %v3412_v54, %v3422_v14  ;;  %v2696_v54 = vld [vmem:[%s3547_s21 + $0x68] sm:$0xff] }
 0xec3   :  { %v1832_v16 = vadd.f32 %v2772_v15, %v1831_v4 }
 0xec4   :  { %v1891_v57 = vadd.f32 %v1889_v56, %v3326_v62 }
 0xec5   :  { %1933 = vmatpush.msra.mxu2 %v1832_v16 }
 0xec6   :  { %v1893_v58 = vsel %vm233_vm1, %v1891_v57, -inf }
 0xec7   :  { %1894 = vmax.xlane.f32.xlu1 %v1893_v58  ;;  %2016 = vmatpush.msrb.mxu2 %v2684_v11 }
 0xec9   :  { %v1886_v59 = vpop.f32.mrf.mxu1  ;;  %2017 = vmatpush.msrb.mxu2 %v2683_v22 }
 0xeca   :  { %v1890_v60 = vmul.f32 0.35355338, %v1886_v59  ;;  %v1834_v25 = vpop.f32.mrf.mxu3 }
 0xecb   :  { %v1835_v26 = vadd.f32 %v2772_v15, %v1834_v25  ;;  %2018 = vmatpush.msrb.mxu2 %v2682_v24  ;;  %v2708_v24 = vld [vmem:[%s3549_s29 + $0x18] sm:$0xff] }
 0xecc   :  { %v1892_v7 = vadd.f32 %v1890_v60, %v3326_v62 }
 0xecd   :  { %1956 = vmatpush.msrb.mxu0 %v1835_v26  ;;  %2019 = vmatpush.msrb.mxu2 %v2681_v27 }
 0xece   :  { %v1896_v63 = vsel %vm233_vm1, %v1892_v7, -inf }
 0xecf   :  { %1897 = vmax.xlane.f32.xlu2 %v1896_v63  ;;  %2082 = vmatpush.msra.mxu0 %v2698_v50  ;;  %v2317_v50 = vld [vmem:[%s3551_s8 + $0x18] sm:$0xff] }
 0xed2   :  { %v2054_v36 = vpop.f32.mrf.mxu3 }
 0xed3   :  { %v2055_v37 = vadd.f32 %v2773_v35, %v2054_v36 }
 0xed5   :  { %2702 = vmatpush.xpose.msk.msra.mxu1 %vm233_vm1, %v2055_v37 }
 0xeda   :  { %v2057_v38 = vpop.f32.mrf.mxu3 }
 0xedb   :  { %v2058_v39 = vadd.f32 %v2773_v35, %v2057_v38 }
 0xf3a   :  { %v1895_v9 = vpop.xlane.xlu1 %1894 }
 0xf3b   :  { %v1899_v0 = vsub.f32 %v1891_v57, %v1895_v9 }
 0xf3d   :  { %v1901_v1 = vmul.f32 1.442695, %v1899_v0 }
 0xf3f   :  { %2837 = vpow2.f32 %v1901_v1  ;;  %v2697_v1 = vld [vmem:[%s3547_s21 + $0x70] sm:$0xff] }
 0xf40   :  { %2083 = vmatpush.msra.mxu0 %v2697_v1  ;;  %v2356_v1 = vld [vmem:[%s3552_s14 + $0x18] sm:$0xff] }
 0xf42   :  { %v1898_v2 = vpop.xlane.xlu2 %1897  ;;  %2084 = vmatpush.msra.mxu0 %v2696_v54 }
 0xf43   :  { %v1900_v3 = vsub.f32 %v1892_v7, %v1898_v2  ;;  %v2695_v2 = vld [vmem:[%s3547_s21 + $0x60] sm:$0xff] }
 0xf44   :  { %2085 = vmatpush.msra.mxu0 %v2695_v2 }
 0xf45   :  { %v2838_v5 = vpop.eup %2837  ;;  %v1903_v6 = vmul.f32 1.442695, %v1900_v3 }
 0xf46   :  { %v1905_v8 = vsel %vm233_vm1, %v2838_v5, 0.0 }
 0xf47   :  { %2839 = vpow2.f32 %v1903_v6  ;;  %1906 = vadd.xlane.f32.xlu0 %v1905_v8 }
 0xf4d   :  { %v2840_v10 = vpop.eup %2839 }
 0xf4e   :  { %v1908_v12 = vsel %vm233_vm1, %v2840_v10, 0.0 }
 0xf4f   :  { %1909 = vadd.xlane.f32.xlu1 %v1908_v12 }
 0xfba   :  { %v1907_v28 = vpop.xlane.xlu0 %1906 }
 0xfbb   :  { %2841 = vrcp.f32 %v1907_v28  ;;  %v2776_v28 = vld [vmem:[%s3550_s3] ss:$0 sm:$0xff] }
 0xfc1   :  { %v2842_v29 = vpop.eup %2841 }
 0xfc2   :  { %v1913_v30 = vmul.f32 %v2842_v29, %v2838_v5  ;;  %v1910_v31 = vpop.xlane.xlu1 %1909 }
 0xfc3   :  { %2843 = vrcp.f32 %v1910_v31 }
 0xfc4   :  { %2676 = vmatmul.msk.f32.vlgmr.msra.gmra.mxu2 %vm233_vm1, %v1913_v30 }
 0xfc5   :  { %2704 = vmatpush.xpose.msk.msra.mxu2 %vm233_vm1, %v2058_v39 }
 0xfc9   :  { %v2844_v32 = vpop.eup %2843 }
 0xfca   :  { %v1914_v33 = vmul.f32 %v2844_v32, %v2840_v10 }
 0xfcc   :  { %2677 = vmatmul.msk.f32.vlgmr.msrb.gmra.mxu0 %vm233_vm1, %v1914_v33  ;;  %2686 = vmatmul.msk.f32.vlgmr.msrb.gmra.mxu2 %vm141_vm0, %v3303_v41 }
 0xfcd   :  { %2340 = vmatpush.msrb.mxu2 %v2317_v50 }
 0xfd4   :  { %2687 = vmatmul.msk.f32.gmra.mxu2 %vm141_vm0, %v3307_v46  ;;  %2700 = vmatmul.msk.f32.vlgmr.msra.gmra.mxu0 %vm141_vm0, %v3289_v17  ;;  %v2775_v17 = vld [vmem:[%s3548_s25 + $0x3] ss:$0 sm:$0xff] }
 0xfdc   :  { %2701 = vmatmul.msk.f32.gmra.mxu0 %vm141_vm0, %v3296_v20 }
0x1047   :  { %v1935_v40 = vpop.f32.mrf.mxu2 }
0x1048   :  { %2679 = vmatmul.msk.f32.vlgmr.msrb.gmra.mxu1 %vm233_vm1, %v1935_v40 }
0x1049   :  { %v1958_v42 = vpop.f32.mrf.mxu0  ;;  %2240 = vmatpush.msrb.mxu1 %v2708_v24  ;;  %v2353_v24 = vld [vmem:[%s3552_s14] sm:$0xff] }
0x104f   :  { %v2021_v43 = vpop.f32.mrf.mxu2 }
0x1050   :  { %2680 = vmatmul.msk.f32.gmra.mxu1 %vm233_vm1, %v1958_v42  ;;  %v2022_v45 = vadd.f32 %v2774_v44, %v2021_v43 }
0x1051   :  { %v2087_v4 = vpop.f32.mrf.mxu0 }
0x1052   :  { %v2088_v20 = vadd.f32 %v2775_v17, %v2087_v4 }
0x1054   :  { %2189 = vmatpush.msrb.mxu0 %v2088_v20 }
0x1057   :  { %v2024_v47 = vpop.f32.mrf.mxu2 }
0x1058   :  { %v2025_v48 = vadd.f32 %v2774_v44, %v2024_v47  ;;  %2703 = vmatmul.msk.f32.vlgmr.msra.gmra.mxu1 %vm233_vm1, %v2022_v45 }
0x1059   :  { %v2090_v16 = vpop.f32.mrf.mxu0 }
0x105a   :  { %2705 = vmatmul.msk.f32.vlgmr.msra.gmra.mxu2 %vm233_vm1, %v2025_v48  ;;  %v2091_v18 = vadd.f32 %v2775_v17, %v2090_v16 }
0x105c   :  { %2212 = vmatpush.msra.mxu0 %v2091_v18 }
0x10c5   :  { %v1986_v52 = vpop.f32.mrf.mxu1 }
0x10c6   :  { %v1992_v53 = vadd.f32 %v1986_v52, %v1733_v51  ;;  %v2316_v51 = vld [vmem:[%s3551_s8 + $0x10] sm:$0xff]  ;;  %v2315_v52 = vld [vmem:[%s3551_s8 + $0x8] sm:$0xff] }
0x10c7   :  { %2341 = vmatpush.msrb.mxu2 %v2316_v51 }
0x10c9   :  { %2342 = vmatpush.msrb.mxu2 %v2315_v52 }
0x10cd   :  { %v1989_v56 = vpop.f32.mrf.mxu1 }
0x10ce   :  { %v3456_v57 = vadd.f32 %v1989_v56, %v1736_v55 }
0x10d5   :  { %v2116_v58 = vpop.f32.mrf.mxu1 }
0x10d6   :  { %v2145_v59 = vmul.f32 0.35355338, %v2116_v58  ;;  %v2360_v58 = vld [vmem:[%s3552_s14 + $0x38] sm:$0xff] }
0x10d7   :  { %2380 = vmatpush.msra.mxu3 %v2360_v58 }
0x10d8   :  { %v2147_v60 = vadd.f32 %v2145_v59, %v3326_v62  ;;  %v2359_v59 = vld [vmem:[%s3552_s14 + $0x30] sm:$0xff] }
0x10d9   :  { %2381 = vmatpush.msra.mxu3 %v2359_v59 }
0x10da   :  { %v2149_v7 = vsel %vm233_vm1, %v2147_v60, -inf }
0x10db   :  { %2150 = vmax.xlane.f32.xlu2 %v2149_v7 }
0x10dd   :  { %v2142_v49 = vpop.f32.mrf.mxu2 }
0x10de   :  { %v2146_v63 = vmul.f32 0.35355338, %v2142_v49 }
0x10e0   :  { %v2148_v9 = vadd.f32 %v2146_v63, %v3326_v62  ;;  %v2357_v63 = vld [vmem:[%s3552_s14 + $0x20] sm:$0xff] }
0x10e2   :  { %v2152_v0 = vsel %vm233_vm1, %v2148_v9, -inf }
0x10e3   :  { %2153 = vmax.xlane.f32.xlu0 %v2152_v0 }
0x114e   :  { %v2151_v3 = vpop.xlane.xlu2 %2150 }
0x114f   :  { %v2155_v5 = vsub.f32 %v2147_v60, %v2151_v3  ;;  %v2358_v60 = vld [vmem:[%s3552_s14 + $0x28] sm:$0xff] }
0x1150   :  { %2382 = vmatpush.msra.mxu3 %v2358_v60 }
0x1151   :  { %v2157_v6 = vmul.f32 1.442695, %v2155_v5 }
0x1152   :  { %2383 = vmatpush.msra.mxu3 %v2357_v63 }
0x1153   :  { %2845 = vpow2.f32 %v2157_v6 }
0x1154   :  { %2384 = vmatpush.msra.mxu3 %v2356_v1 }
0x1156   :  { %v2154_v62 = vpop.xlane.xlu0 %2153 }
0x1157   :  { %v2156_v8 = vsub.f32 %v2148_v9, %v2154_v62 }
0x1159   :  { %v2846_v10 = vpop.eup %2845  ;;  %v2159_v12 = vmul.f32 1.442695, %v2156_v8 }
0x115a   :  { %v2161_v13 = vsel %vm233_vm1, %v2846_v10, 0.0 }
0x115b   :  { %2847 = vpow2.f32 %v2159_v12  ;;  %2162 = vadd.xlane.f32.xlu1 %v2161_v13 }
0x1161   :  { %v2848_v14 = vpop.eup %2847 }
0x1162   :  { %v2164_v15 = vsel %vm233_vm1, %v2848_v14, 0.0 }
0x1163   :  { %2165 = vadd.xlane.f32.xlu2 %v2164_v15  ;;  %v2778_v15 = vld [vmem:[%s3554_s24] ss:$0 sm:$0xff] }
0x11ce   :  { %v2163_v19 = vpop.xlane.xlu1 %2162 }
0x11cf   :  { %2849 = vrcp.f32 %v2163_v19 }
0x11d5   :  { %v2850_v11 = vpop.eup %2849 }
0x11d6   :  { %v2169_v21 = vmul.f32 %v2850_v11, %v2846_v10  ;;  %v2166_v22 = vpop.xlane.xlu2 %2165  ;;  %v2777_v10 = vld [vmem:[%s3553_s19] ss:$0 sm:$0xff] }
0x11d7   :  { %2851 = vrcp.f32 %v2166_v22 }
0x11d8   :  { %2706 = vmatmul.msk.f32.vlgmr.msrb.gmra.mxu0 %vm233_vm1, %v2169_v21 }
0x11dd   :  { %v2852_v23 = vpop.eup %2851 }
0x11de   :  { %v2170_v25 = vmul.f32 %v2852_v23, %v2848_v14  ;;  %v2355_v23 = vld [vmem:[%s3552_s14 + $0x10] sm:$0xff] }
0x11df   :  { %2385 = vmatpush.msra.mxu3 %v2355_v23 }
0x11e0   :  { %2707 = vmatmul.msk.f32.vlgmr.msra.gmra.mxu0 %vm233_vm1, %v2170_v25  ;;  %v2354_v25 = vld [vmem:[%s3552_s14 + $0x8] sm:$0xff] }
0x11e1   :  { %2386 = vmatpush.msra.mxu3 %v2354_v25 }
0x11e3   :  { %2387 = vmatpush.msra.mxu3 %v2353_v24 }
0x1255   :  { %v2191_v26 = vpop.f32.mrf.mxu0 }
0x1256   :  { %2709 = vmatmul.msk.f32.vlgmr.msrb.gmra.mxu1 %vm233_vm1, %v2191_v26  ;;  %v2779_v26 = vld [vmem:[%s3555_s30] ss:$0 sm:$0xff] }
0x125d   :  { %v2214_v27 = vpop.f32.mrf.mxu0 }
0x125e   :  { %2710 = vmatmul.msk.f32.gmra.mxu1 %vm233_vm1, %v2214_v27 }
0x12d3   :  { %v2242_v29 = vpop.f32.mrf.mxu1 }
0x12d4   :  { %v2248_v30 = vadd.f32 %v2242_v29, %v1992_v53  ;;  %v2314_v53 = vld [vmem:[%s3551_s8] sm:$0xff] }
0x12d5   :  { %2343 = vmatpush.msrb.mxu2 %v2314_v53 }
0x12d6   :  { %v2254_v31 = vadd.f32 %v2776_v28, %v2248_v30 }
0x12d8   :  { %v2256_v32 = vadd.f32 %v2254_v31, %v3303_v41 }
0x12da   :  { %v2260_v33 = vsel %vm141_vm0, %v2256_v32, 0.0 }
0x12db   :  { %2261 = vadd.xlane.f32.xlu0 %v2260_v33  ;;  %v2245_v34 = vpop.f32.mrf.mxu1  ;;  %v2780_v33 = vld [vmem:[%s3064_s20] ss:$0 sm:$0xff]  ;;  %s2461_s20 = sshll.u32 %s3079_s17, 4  ;;  %s2462_s20 = int_to_ptr.hbm [resolvable:$true] %s2461_s20 }
0x12dc   :  { %v2249_v35 = vadd.f32 %v2245_v34, %v3456_v57  ;;  %s2873_s27 = sshra.s32 %s2462_s20, 4  ;;  %s2874_s27 = int_to_ptr.hbm [resolvable:$true] %s2873_s27 }
0x12dd   :  { %p2878_p1 = scmp.lt.s32.totalorder %s2874_s27, %s3079_s17 }
0x12de   :  { %v2255_v36 = vadd.f32 %v2776_v28, %v2249_v35 }
0x12e0   :  { %v2257_v37 = vadd.f32 %v2255_v36, %v3307_v46 }
0x12e2   :  { %v2263_v38 = vsel %vm141_vm0, %v2257_v37, 0.0 }
0x12e3   :  { %2264 = vadd.xlane.f32.xlu1 %v2263_v38 }
0x134e   :  { %v2262_v39 = vpop.xlane.xlu0 %2261 }
0x134f   :  { %v2266_v40 = vmul.f32 %v2262_v39, %v3275_v61 }
0x1351   :  { %v2268_v42 = vsub.f32 %v2256_v32, %v2266_v40 }
0x1353   :  { %v2270_v41 = vmul.f32 %v2268_v42, %v2268_v42 }
0x1355   :  { %v2272_v43 = vsel %vm141_vm0, %v2270_v41, 0.0 }
0x1356   :  { %2273 = vadd.xlane.f32.xlu2 %v2272_v43  ;;  %v2265_v44 = vpop.xlane.xlu1 %2264 }
0x1357   :  { %v2267_v45 = vmul.f32 %v2265_v44, %v3275_v61 }
0x1359   :  { %v2269_v47 = vsub.f32 %v2257_v37, %v2267_v45 }
0x135b   :  { %v2271_v46 = vmul.f32 %v2269_v47, %v2269_v47 }
0x135d   :  { %v2275_v48 = vsel %vm141_vm0, %v2271_v46, 0.0 }
0x135e   :  { %2276 = vadd.xlane.f32.xlu0 %v2275_v48 }
0x13c9   :  { %v2274_v55 = vpop.xlane.xlu2 %2273 }
0x13ca   :  { %v2278_v56 = vmul.f32 %v2274_v55, %v3275_v61 }
0x13cc   :  { %v2280_v57 = vadd.f32 1e-05, %v2278_v56 }
0x13ce   :  { %2853 = vrsqrt.f32 %v2280_v57  ;;  %vm2288_vm10 = vweird.f32 %v2280_v57 }
0x13d1   :  { %v2277_v7 = vpop.xlane.xlu0 %2276 }
0x13d2   :  { %v2279_v49 = vmul.f32 %v2277_v7, %v3275_v61 }
0x13d4   :  { %v2854_v9 = vpop.eup %2853  ;;  %v2281_v0 = vadd.f32 1e-05, %v2279_v49 }
0x13d5   :  { %v2283_v54 = vmul.f32 %v2854_v9, %v2280_v57  ;;  %vm2289_vm9 = vweird.f32 %v2854_v9 }
0x13d6   :  { %2855 = vrsqrt.f32 %v2281_v0  ;;  %vm2290_vm11 = vmor %vm2288_vm10, %vm2289_vm9  ;;  %vm2298_vm13 = vweird.f32 %v2281_v0 }
0x13d7   :  { %v2284_v2 = vmul.f32 %v2854_v9, %v2283_v54 }
0x13d9   :  { %v2285_v3 = vmul.f32 0.5, %v2284_v2  ;;  %v2781_v2 = vld [vmem:[%s3069_s6] ss:$0 sm:$0xff]  ;;  %s2918_s6 = smov [#allocation2]  }
0x13da   :  { %s2459_s12 = sshll.u32 %s2918_s6, 4  ;;  %s2460_s12 = int_to_ptr.vmem [resolvable:$true] %s2459_s12 }
0x13db   :  { %v2286_v5 = vsub.f32 1.5, %v2285_v3 }
0x13dc   :  { %v2856_v6 = vpop.eup %2855 }
0x13dd   :  { %v2287_v62 = vmul.f32 %v2854_v9, %v2286_v5  ;;  %v2293_v8 = vmul.f32 %v2856_v6, %v2281_v0  ;;  %vm2299_vm12 = vweird.f32 %v2856_v6 }
0x13de   :  { %vm2300_vm14 = vmor %vm2298_vm13, %vm2299_vm12 }
0x13df   :  { %v2291_v12 = vsel %vm2290_vm11, %v2854_v9, %v2287_v62  ;;  %v2294_v13 = vmul.f32 %v2856_v6, %v2293_v8 }
0x13e0   :  { %v2302_v14 = vmul.f32 %v2291_v12, %v2268_v42 }
0x13e1   :  { %v2295_v17 = vmul.f32 0.5, %v2294_v13 }
0x13e2   :  { %v2307_v4 = vmul.f32 %v2777_v10, %v2302_v14 }
0x13e3   :  { %v2296_v20 = vsub.f32 1.5, %v2295_v17 }
0x13e4   :  { %v2312_v16 = vadd.f32 %v2778_v15, %v2307_v4 }
0x13e5   :  { %v2297_v18 = vmul.f32 %v2856_v6, %v2296_v20 }
0x13e6   :  { %2711 = vmatmul.msk.f32.vlgmr.msrb.gmra.mxu2 %vm141_vm0, %v2312_v16 }
0x13e7   :  { %v2301_v19 = vsel %vm2300_vm14, %v2856_v6, %v2297_v18 }
0x13e8   :  { %v2303_v11 = vmul.f32 %v2301_v19, %v2269_v47 }
0x13ea   :  { %v2308_v21 = vmul.f32 %v2777_v10, %v2303_v11 }
0x13ec   :  { %v2313_v22 = vadd.f32 %v2778_v15, %v2308_v21 }
0x13ee   :  { %2712 = vmatmul.msk.f32.gmra.mxu2 %vm141_vm0, %v2313_v22 }
0x1469   :  { %v2345_v27 = vpop.f32.mrf.mxu2 }
0x146a   :  { %v2346_v28 = vadd.f32 %v2779_v26, %v2345_v27 }
0x146c   :  { %v2351_v29 = vmax.f32 %v2346_v28, 0.0 }
0x146e   :  { %2713 = vmatmul.msk.f32.vlgmr.msra.gmra.mxu3 %vm2365_vm15, %v2351_v29 }
0x1471   :  { %v2348_v30 = vpop.f32.mrf.mxu2 }
0x1472   :  { %v2349_v31 = vadd.f32 %v2779_v26, %v2348_v30 }
0x1474   :  { %v2352_v32 = vmax.f32 %v2349_v31, 0.0 }
0x1476   :  { %2714 = vmatmul.msk.f32.gmra.mxu3 %vm2365_vm15, %v2352_v32 }
0x14f1   :  { %v2389_v34 = vpop.f32.mrf.mxu3 }
0x14f2   :  { %v2390_v35 = vadd.f32 %v2780_v33, %v2389_v34 }
0x14f4   :  { %v2395_v36 = vadd.f32 %v2390_v35, %v2312_v16 }
0x14f6   :  { %v2399_v37 = vsel %vm141_vm0, %v2395_v36, 0.0 }
0x14f7   :  { %2400 = vadd.xlane.f32.xlu1 %v2399_v37 }
0x14f9   :  { %v2392_v38 = vpop.f32.mrf.mxu3 }
0x14fa   :  { %v2393_v39 = vadd.f32 %v2780_v33, %v2392_v38 }
0x14fc   :  { %v2396_v40 = vadd.f32 %v2393_v39, %v2313_v22 }
0x14fe   :  { %v2402_v42 = vsel %vm141_vm0, %v2396_v40, 0.0 }
0x14ff   :  { %2403 = vadd.xlane.f32.xlu2 %v2402_v42 }
0x156a   :  { %v2401_v41 = vpop.xlane.xlu1 %2400 }
0x156b   :  { %v2405_v43 = vmul.f32 %v2401_v41, %v3275_v61 }
0x156d   :  { %v2407_v44 = vsub.f32 %v2395_v36, %v2405_v43 }
0x156f   :  { %v2409_v45 = vmul.f32 %v2407_v44, %v2407_v44 }
0x1571   :  { %v2411_v47 = vsel %vm141_vm0, %v2409_v45, 0.0 }
0x1572   :  { %v2404_v46 = vpop.xlane.xlu2 %2403  ;;  %2412 = vadd.xlane.f32.xlu0 %v2411_v47 }
0x1573   :  { %v2406_v48 = vmul.f32 %v2404_v46, %v3275_v61 }
0x1575   :  { %v2408_v50 = vsub.f32 %v2396_v40, %v2406_v48 }
0x1577   :  { %v2410_v51 = vmul.f32 %v2408_v50, %v2408_v50 }
0x1579   :  { %v2414_v52 = vsel %vm141_vm0, %v2410_v51, 0.0 }
0x157a   :  { %2415 = vadd.xlane.f32.xlu1 %v2414_v52 }
0x15e5   :  { %v2413_v53 = vpop.xlane.xlu0 %2412 }
0x15e6   :  { %v2417_v55 = vmul.f32 %v2413_v53, %v3275_v61 }
0x15e8   :  { %v2419_v56 = vadd.f32 1e-05, %v2417_v55 }
0x15ea   :  { %2857 = vrsqrt.f32 %v2419_v56  ;;  %vm2427_vm2 = vweird.f32 %v2419_v56 }
0x15ed   :  { %v2416_v57 = vpop.xlane.xlu1 %2415 }
0x15ee   :  { %v2418_v58 = vmul.f32 %v2416_v57, %v3275_v61  ;;  %v2782_v61 = vld [vmem:[%s3074_s4] ss:$0 sm:$0xff]  ;;  %s2875_s4 = scalar_lea.hbm %s2874_s27, 16 }
0x15ef   :  { %p2876_p0 = scmp.ne.s32.totalorder %s2874_s27, %s2875_s4  ;;  %p2879_p2 = scmp.lt.s32.totalorder %s2877_s15, %s2875_s4 }
0x15f0   :  { %v2858_v59 = vpop.eup %2857  ;;  %v2420_v60 = vadd.f32 1e-05, %v2418_v58 }
0x15f1   :  { %v2422_v7 = vmul.f32 %v2858_v59, %v2419_v56  ;;  %vm2428_vm1 = vweird.f32 %v2858_v59  ;;  %p2880_p3 = por %p2879_p2, %p2878_p1 }
0x15f2   :  { %2859 = vrsqrt.f32 %v2420_v60  ;;  %vm2429_vm3 = vmor %vm2427_vm2, %vm2428_vm1  ;;  %vm2437_vm5 = vweird.f32 %v2420_v60 }
0x15f3   :  { %v2423_v49 = vmul.f32 %v2858_v59, %v2422_v7  ;;  %p2881_p4 = pnand %p2880_p3, %p2876_p0 }
0x15f5   :  { %v2424_v63 = vmul.f32 0.5, %v2423_v49 }
0x15f7   :  { %v2425_v9 = vsub.f32 1.5, %v2424_v63 }
0x15f8   :  { %v2860_v0 = vpop.eup %2859 }
0x15f9   :  { %v2426_v1 = vmul.f32 %v2858_v59, %v2425_v9  ;;  %v2432_v54 = vmul.f32 %v2860_v0, %v2420_v60  ;;  %vm2438_vm4 = vweird.f32 %v2860_v0 }
0x15fa   :  { %vm2439_vm6 = vmor %vm2437_vm5, %vm2438_vm4 }
0x15fb   :  { %v2430_v3 = vsel %vm2429_vm3, %v2858_v59, %v2426_v1  ;;  %v2433_v5 = vmul.f32 %v2860_v0, %v2432_v54 }
0x15fc   :  { %v2441_v6 = vmul.f32 %v2430_v3, %v2407_v44 }
0x15fd   :  { %v2434_v62 = vmul.f32 0.5, %v2433_v5 }
0x15fe   :  { %v2446_v8 = vmul.f32 %v2781_v2, %v2441_v6 }
0x15ff   :  { %v2435_v10 = vsub.f32 1.5, %v2434_v62 }
0x1600   :  { %v2451_v12 = vadd.f32 %v2782_v61, %v2446_v8 }
0x1601   :  { %v2436_v13 = vmul.f32 %v2860_v0, %v2435_v10 }
0x1602   :  { %2453 = vst.msk [vmem:[#allocation2] sm:$0xff] %vm141_vm0, %v2451_v12 }
0x1603   :  { %v2440_v14 = vsel %vm2439_vm6, %v2860_v0, %v2436_v13 }
0x1604   :  { %v2442_v15 = vmul.f32 %v2440_v14, %v2408_v50 }
0x1606   :  { %v2447_v17 = vmul.f32 %v2781_v2, %v2442_v15 }
0x1608   :  { %v2452_v4 = vadd.f32 %v2782_v61, %v2447_v17 }
0x160a   :  { %2454 = vst.msk [vmem:[#allocation2 + $0x8] sm:$0xff] %vm141_vm0, %v2452_v4 }
0x160b   :  { %2884 = shalt.err (!%p2881_p4)
}
0x160c   :  { %s2919_s16 = smov 128   ;;  %s2920_s18 = smov 8  }
0x160d   :  { %2467 = dma.vmem_to_hbm [thread:$0]  %s2460_s12, 256, %s2462_s20, [#allocation3], %s2919_s16, %s2919_s16, %s2920_s18  }
0x160e   :  { %2885 = dma.done.wait [#allocation3], 256  }
0x160f   :  { %2886 = vsyncadd [#allocation3], 4294967040 }
0x1610   :  { %2472 = vsyncpa [#allocation3], 1 }

</bundles_post_ra>
